<compile_context>
chip_gen: v7x
topology: tpu7x:2x2x1
jax: 0.10.0
libtpu: 0.0.40
codegen_flags: <defaults>
</compile_context>

<pallas_src>
import functools

import jax
import jax.numpy as jnp
from jax.experimental import pallas as pl
from jax.experimental.pallas import tpu as pltpu

EPS = 1e-5


def _conv1x1_bn_kernel(x_ref, w_ref, gamma_ref, beta_ref, o_ref,
                       y_scr, sum_scr, ssq_scr, *, inv_m, mxu_dtype):
    # x_ref:     (C_in, HW)     this batch element's activations (no transpose)
    # w_ref:     (C_out, C_in)  1x1 conv weight (resident across the grid)
    # gamma_ref: (C_out, 1)     BN affine scale
    # beta_ref:  (C_out, 1)     BN affine shift
    # o_ref:     (N, C_out, HW) full output, resident across the N axis
    # y_scr:     (N, C_out, HW) f32 pre-BN conv results
    # sum_scr:   (C_out, 1)     f32 running per-channel sum
    # ssq_scr:   (C_out, 1)     f32 running per-channel sum of squares
    n = pl.program_id(0)

    @pl.when(n == 0)
    def _init():
        sum_scr[...] = jnp.zeros_like(sum_scr)
        ssq_scr[...] = jnp.zeros_like(ssq_scr)

    # Mixed-precision MXU: bf16 operands (no-op cast if caller already feeds bf16),
    # f32 accumulation.
    y = jnp.dot(w_ref[...].astype(mxu_dtype), x_ref[...].astype(mxu_dtype),
                preferred_element_type=jnp.float32)               # (C_out, HW) f32
    y_scr[n] = y

    # One reduction pass per step; 1/M applied once at finalize.
    sum_scr[...] += jnp.sum(y, axis=1, keepdims=True)
    ssq_scr[...] += jnp.sum(y * y, axis=1, keepdims=True)

    @pl.when(n == pl.num_programs(0) - 1)
    def _finalize():
        mean = sum_scr[...] * inv_m                                # (C_out, 1)
        # One-pass variance, clamped against cancellation before rsqrt.
        var = jnp.maximum(ssq_scr[...] * inv_m - mean * mean, 0.0)
        inv_std = jax.lax.rsqrt(var + EPS)                         # EUP slot, f32
        scale = gamma_ref[...].astype(jnp.float32) * inv_std       # (C_out, 1)
        shift = beta_ref[...].astype(jnp.float32) - mean * scale
        o_ref[...] = (y_scr[...] * scale[None] + shift[None]).astype(o_ref.dtype)


def conv2d_bn_forward(x_nchw, w_oihw, gamma, beta, *,
                      mxu_dtype=jnp.bfloat16, out_dtype=None):
    """1x1 conv (no bias) + training-mode BatchNorm2d forward. NCHW in / NCHW out."""
    n, c_in, h, w = x_nchw.shape
    c_out = w_oihw.shape[0]
    hw = h * w
    m = n * hw
    out_dtype = x_nchw.dtype if out_dtype is None else out_dtype

    # Zero-movement reshapes; no wrapper-side dtype casts.
    x3d = x_nchw.reshape(n, c_in, hw)
    w2d = w_oihw.reshape(c_out, c_in)
    gamma2d = gamma.reshape(c_out, 1)
    beta2d = beta.reshape(c_out, 1)

    kernel = functools.partial(_conv1x1_bn_kernel,
                               inv_m=1.0 / float(m), mxu_dtype=mxu_dtype)

    cost = pl.CostEstimate(
        flops=2 * m * c_in * c_out + 6 * m * c_out,
        transcendentals=c_out,
        bytes_accessed=(x3d.size * x3d.dtype.itemsize
                        + w2d.size * w2d.dtype.itemsize
                        + m * c_out * jnp.dtype(out_dtype).itemsize
                        + 2 * c_out * 4),
    )

    out3d = pl.pallas_call(
        kernel,
        out_shape=jax.ShapeDtypeStruct((n, c_out, hw), out_dtype),
        grid_spec=pltpu.PrefetchScalarGridSpec(
            num_scalar_prefetch=0,
            grid=(n,),
            in_specs=[
                # Activation block for batch element i: kernel sees (C_in, HW).
                pl.BlockSpec((pl.Squeezed(), c_in, hw), lambda i: (i, 0, 0)),
                pl.BlockSpec((c_out, c_in), lambda i: (0, 0)),
                pl.BlockSpec((c_out, 1), lambda i: (0, 0)),
                pl.BlockSpec((c_out, 1), lambda i: (0, 0)),
            ],
            # Output resident across the N axis; written once on the last step.
            out_specs=pl.BlockSpec((n, c_out, hw), lambda i: (0, 0, 0)),
            scratch_shapes=[
                pltpu.VMEM((n, c_out, hw), jnp.float32),  # pre-BN conv results
                pltpu.VMEM((c_out, 1), jnp.float32),      # per-channel sum
                pltpu.VMEM((c_out, 1), jnp.float32),      # per-channel sum of squares
            ],
        ),
        compiler_params=pltpu.CompilerParams(
            dimension_semantics=("arbitrary",)),
        cost_estimate=cost,
    )(x3d, w2d, gamma2d, beta2d)

    return out3d.reshape(n, c_out, h, w)


def reference_forward(x_nchw, w_oihw, gamma, beta):
    """Pure-JAX f32 reference (two-pass variance), matches torch BN training forward."""
    n, c_in, h, w = x_nchw.shape
    c_out = w_oihw.shape[0]
    x2d = jnp.transpose(x_nchw, (0, 2, 3, 1)).reshape(n * h * w, c_in)
    y = x2d @ jnp.transpose(w_oihw.reshape(c_out, c_in), (1, 0))
    mean = jnp.mean(y, axis=0, keepdims=True)
    var = jnp.mean((y - mean) ** 2, axis=0, keepdims=True)
    y = (y - mean) / jnp.sqrt(var + EPS) * gamma.reshape(1, -1) + beta.reshape(1, -1)
    return jnp.transpose(y.reshape(n, h, w, c_out), (0, 3, 1, 2))


if __name__ == "__main__":
    # Module shapes: x217 = [1, 672, 14, 14]; Conv2d(672 -> 112, 1x1); BN(112).
    N, C_IN, H, W = 1, 672, 14, 14
    C_OUT = 112

    key = jax.random.PRNGKey(0)
    kx, kw, kg, kb = jax.random.split(key, 4)

    x = jax.random.normal(kx, (N, C_IN, H, W), dtype=jnp.float32)
    w_conv = jax.random.normal(kw, (C_OUT, C_IN, 1, 1), dtype=jnp.float32) * 0.05
    gamma = 1.0 + 0.1 * jax.random.normal(kg, (C_OUT,), dtype=jnp.float32)
    beta = 0.1 * jax.random.normal(kb, (C_OUT,), dtype=jnp.float32)

    ref = jax.block_until_ready(reference_forward(x, w_conv, gamma, beta))

    # Exact-parity check (f32 MXU operands): validates conv + BN math tightly.
    out_f32 = jax.block_until_ready(
        conv2d_bn_forward(x, w_conv, gamma, beta, mxu_dtype=jnp.float32))
    assert out_f32.shape == (N, C_OUT, H, W)
    assert jnp.allclose(out_f32, ref, atol=1e-4, rtol=1e-4)

    # Default perf path (bf16 MXU operands, f32 accumulate + f32 BN arithmetic).
    out = jax.block_until_ready(conv2d_bn_forward(x, w_conv, gamma, beta))
    assert out.shape == (N, C_OUT, H, W)
    assert jnp.allclose(out, ref, atol=5e-2, rtol=5e-2)

    # Exercise the N>1 grid/accumulator path (cross-batch BN stats, no transposes).
    x2 = jax.random.normal(kx, (2, C_IN, H, W), dtype=jnp.float32)
    out_n2 = jax.block_until_ready(
        conv2d_bn_forward(x2, w_conv, gamma, beta, mxu_dtype=jnp.float32))
    ref_n2 = jax.block_until_ready(reference_forward(x2, w_conv, gamma, beta))
    assert jnp.allclose(out_n2, ref_n2, atol=1e-4, rtol=1e-4)

    print("KERNEL_OK")
</pallas_src>

<mosaic_0001>
module attributes {stable_mosaic.version = 11 : i64} {
  func.func @_conv1x1_bn_kernel(%arg0: i32, %arg1: memref<1x672x196xf32, #tpu.memory_space<vmem>>, %arg2: memref<112x672xf32, #tpu.memory_space<vmem>>, %arg3: memref<112x1xf32, #tpu.memory_space<vmem>>, %arg4: memref<112x1xf32, #tpu.memory_space<vmem>>, %arg5: memref<1x112x196xf32, #tpu.memory_space<vmem>>, %arg6: memref<1x112x196xf32, #tpu.memory_space<vmem>>, %arg7: memref<112x1xf32, #tpu.memory_space<vmem>>, %arg8: memref<112x1xf32, #tpu.memory_space<vmem>>) attributes {dimension_semantics = [#tpu.dimension_semantics<arbitrary>], iteration_bounds = array<i64: 1>, scalar_prefetch = 0 : i64, scratch_operands = 3 : i64, tpu.core_type = #tpu.core_type<tc>, window_params = [{transform_indices = @transform_0, window_bounds = array<i64: 1, 672, 196>}, {pipeline_mode = #tpu.pipeline_mode<synchronous>, transform_indices = @transform_1, window_bounds = array<i64: 112, 672>}, {pipeline_mode = #tpu.pipeline_mode<synchronous>, transform_indices = @transform_2, window_bounds = array<i64: 112, 1>}, {pipeline_mode = #tpu.pipeline_mode<synchronous>, transform_indices = @transform_3, window_bounds = array<i64: 112, 1>}, {pipeline_mode = #tpu.pipeline_mode<synchronous>, transform_indices = @transform_4, window_bounds = array<i64: 1, 112, 196>}]} {
    %c0_i32 = arith.constant 0 : i32
    %0 = arith.cmpi eq, %arg0, %c0_i32 : i32
    %1 = arith.extui %0 : i1 to i32
    %c0_i32_0 = arith.constant 0 : i32
    %2 = arith.cmpi ne, %1, %c0_i32_0 : i32
    scf.if %2 {
      %cst_19 = arith.constant 0.000000e+00 : f32
      %25 = vector.broadcast %cst_19 : f32 to vector<112x1xf32>
      %c0_20 = arith.constant 0 : index
      %c0_21 = arith.constant 0 : index
      %26 = vector.load %arg7[%c0_20, %c0_21] : memref<112x1xf32, #tpu.memory_space<vmem>>, vector<112x1xf32>
      tpu.vector_store %arg7[%c0_20, %c0_21], %25 {strides = array<i32>} : memref<112x1xf32, #tpu.memory_space<vmem>>, vector<112x1xf32>,
      %cst_22 = arith.constant 0.000000e+00 : f32
      %27 = vector.broadcast %cst_22 : f32 to vector<112x1xf32>
      %c0_23 = arith.constant 0 : index
      %c0_24 = arith.constant 0 : index
      %28 = vector.load %arg8[%c0_23, %c0_24] : memref<112x1xf32, #tpu.memory_space<vmem>>, vector<112x1xf32>
      tpu.vector_store %arg8[%c0_23, %c0_24], %27 {strides = array<i32>} : memref<112x1xf32, #tpu.memory_space<vmem>>, vector<112x1xf32>,
    } else {
    }
    %c0 = arith.constant 0 : index
    %c0_1 = arith.constant 0 : index
    %3 = vector.load %arg2[%c0, %c0_1] : memref<112x672xf32, #tpu.memory_space<vmem>>, vector<112x672xf32>
    %c0_2 = arith.constant 0 : index
    %c0_3 = arith.constant 0 : index
    %c0_4 = arith.constant 0 : index
    %4 = vector.load %arg1[%c0_2, %c0_3, %c0_4] : memref<1x672x196xf32, #tpu.memory_space<vmem>>, vector<1x672x196xf32>
    %5 = vector.shape_cast %4 : vector<1x672x196xf32> to vector<672x196xf32>
    %cst = arith.constant dense<0.000000e+00> : vector<112x196xf32>
    %6 = tpu.matmul %3, %5, %cst {dimension_numbers = #tpu.dot_dimension_numbers<[1], [0], [0], [1], [0, 0, 1, 1], [], []>} : vector<112x672xf32>, vector<672x196xf32>, vector<112x196xf32> -> vector<112x196xf32>
    %7 = arith.index_cast %arg0 : i32 to index
    %c0_5 = arith.constant 0 : index
    %c0_6 = arith.constant 0 : index
    %8 = vector.load %arg6[%7, %c0_5, %c0_6] : memref<1x112x196xf32, #tpu.memory_space<vmem>>, vector<1x112x196xf32>
    %9 = vector.shape_cast %8 : vector<1x112x196xf32> to vector<112x196xf32>
    %10 = vector.shape_cast %6 : vector<112x196xf32> to vector<1x112x196xf32>
    tpu.vector_store %arg6[%7, %c0_5, %c0_6], %10 {strides = array<i32>} : memref<1x112x196xf32, #tpu.memory_space<vmem>>, vector<1x112x196xf32>,
    %c0_7 = arith.constant 0 : index
    %c0_8 = arith.constant 0 : index
    %11 = vector.load %arg7[%c0_7, %c0_8] : memref<112x1xf32, #tpu.memory_space<vmem>>, vector<112x1xf32>
    %cst_9 = arith.constant dense<0.000000e+00> : vector<112xf32>
    %12 = vector.multi_reduction <add>, %6, %cst_9 [1] : vector<112x196xf32> to vector<112xf32>
    %13 = vector.shape_cast %12 : vector<112xf32> to vector<112x1xf32>
    %14 = arith.addf %11, %13 : vector<112x1xf32>
    %c0_10 = arith.constant 0 : index
    %c0_11 = arith.constant 0 : index
    %15 = vector.load %arg7[%c0_10, %c0_11] : memref<112x1xf32, #tpu.memory_space<vmem>>, vector<112x1xf32>
    tpu.vector_store %arg7[%c0_10, %c0_11], %14 {strides = array<i32>} : memref<112x1xf32, #tpu.memory_space<vmem>>, vector<112x1xf32>,
    %c0_12 = arith.constant 0 : index
    %c0_13 = arith.constant 0 : index
    %16 = vector.load %arg8[%c0_12, %c0_13] : memref<112x1xf32, #tpu.memory_space<vmem>>, vector<112x1xf32>
    %17 = arith.mulf %6, %6 : vector<112x196xf32>
    %cst_14 = arith.constant dense<0.000000e+00> : vector<112xf32>
    %18 = vector.multi_reduction <add>, %17, %cst_14 [1] : vector<112x196xf32> to vector<112xf32>
    %19 = vector.shape_cast %18 : vector<112xf32> to vector<112x1xf32>
    %20 = arith.addf %16, %19 : vector<112x1xf32>
    %c0_15 = arith.constant 0 : index
    %c0_16 = arith.constant 0 : index
    %21 = vector.load %arg8[%c0_15, %c0_16] : memref<112x1xf32, #tpu.memory_space<vmem>>, vector<112x1xf32>
    tpu.vector_store %arg8[%c0_15, %c0_16], %20 {strides = array<i32>} : memref<112x1xf32, #tpu.memory_space<vmem>>, vector<112x1xf32>,
    %c0_i32_17 = arith.constant 0 : i32
    %22 = arith.cmpi eq, %arg0, %c0_i32_17 : i32
    %23 = arith.extui %22 : i1 to i32
    %c0_i32_18 = arith.constant 0 : i32
    %24 = arith.cmpi ne, %23, %c0_i32_18 : i32
    scf.if %24 {
      %c0_19 = arith.constant 0 : index
      %c0_20 = arith.constant 0 : index
      %25 = vector.load %arg7[%c0_19, %c0_20] : memref<112x1xf32, #tpu.memory_space<vmem>>, vector<112x1xf32>
      %cst_21 = arith.constant 0.00510204071 : f32
      %26 = vector.broadcast %cst_21 : f32 to vector<112x1xf32>
      %27 = arith.mulf %25, %26 : vector<112x1xf32>
      %c0_22 = arith.constant 0 : index
      %c0_23 = arith.constant 0 : index
      %28 = vector.load %arg8[%c0_22, %c0_23] : memref<112x1xf32, #tpu.memory_space<vmem>>, vector<112x1xf32>
      %cst_24 = arith.constant 0.00510204071 : f32
      %29 = vector.broadcast %cst_24 : f32 to vector<112x1xf32>
      %30 = arith.mulf %28, %29 : vector<112x1xf32>
      %31 = arith.mulf %27, %27 : vector<112x1xf32>
      %32 = arith.subf %30, %31 : vector<112x1xf32>
      %cst_25 = arith.constant 0.000000e+00 : f32
      %33 = vector.broadcast %cst_25 : f32 to vector<112x1xf32>
      %34 = arith.maximumf %32, %33 : vector<112x1xf32>
      %cst_26 = arith.constant 9.99999974E-6 : f32
      %35 = vector.broadcast %cst_26 : f32 to vector<112x1xf32>
      %36 = arith.addf %34, %35 : vector<112x1xf32>
      %37 = math.rsqrt %36 : vector<112x1xf32>
      %c0_27 = arith.constant 0 : index
      %c0_28 = arith.constant 0 : index
      %38 = vector.load %arg3[%c0_27, %c0_28] : memref<112x1xf32, #tpu.memory_space<vmem>>, vector<112x1xf32>
      %39 = arith.mulf %38, %37 : vector<112x1xf32>
      %c0_29 = arith.constant 0 : index
      %c0_30 = arith.constant 0 : index
      %40 = vector.load %arg4[%c0_29, %c0_30] : memref<112x1xf32, #tpu.memory_space<vmem>>, vector<112x1xf32>
      %41 = arith.mulf %27, %39 : vector<112x1xf32>
      %42 = arith.subf %40, %41 : vector<112x1xf32>
      %c0_31 = arith.constant 0 : index
      %c0_32 = arith.constant 0 : index
      %c0_33 = arith.constant 0 : index
      %43 = vector.load %arg6[%c0_31, %c0_32, %c0_33] : memref<1x112x196xf32, #tpu.memory_space<vmem>>, vector<1x112x196xf32>
      %44 = vector.shape_cast %39 : vector<112x1xf32> to vector<1x112x1xf32>
      %45 = vector.broadcast %44 : vector<1x112x1xf32> to vector<1x112x196xf32>
      %46 = arith.mulf %43, %45 : vector<1x112x196xf32>
      %47 = vector.shape_cast %42 : vector<112x1xf32> to vector<1x112x1xf32>
      %48 = vector.broadcast %47 : vector<1x112x1xf32> to vector<1x112x196xf32>
      %49 = arith.addf %46, %48 : vector<1x112x196xf32>
      %c0_34 = arith.constant 0 : index
      %c0_35 = arith.constant 0 : index
      %c0_36 = arith.constant 0 : index
      %50 = vector.load %arg5[%c0_34, %c0_35, %c0_36] : memref<1x112x196xf32, #tpu.memory_space<vmem>>, vector<1x112x196xf32>
      tpu.vector_store %arg5[%c0_34, %c0_35, %c0_36], %49 {strides = array<i32>} : memref<1x112x196xf32, #tpu.memory_space<vmem>>, vector<1x112x196xf32>,
    } else {
    }
    return
  }
  func.func @transform_0(%arg0: i32) -> (i32, i32, i32) {
    %c0_i32 = arith.constant 0 : i32
    %c0_i32_0 = arith.constant 0 : i32
    %c0_i32_1 = arith.constant 0 : i32
    return %arg0, %c0_i32, %c0_i32_0 : i32, i32, i32
  }
  func.func @transform_1(%arg0: i32) -> (i32, i32) {
    %c0_i32 = arith.constant 0 : i32
    %c0_i32_0 = arith.constant 0 : i32
    %c0_i32_1 = arith.constant 0 : i32
    return %c0_i32, %c0_i32_0 : i32, i32
  }
  func.func @transform_2(%arg0: i32) -> (i32, i32) {
    %c0_i32 = arith.constant 0 : i32
    %c0_i32_0 = arith.constant 0 : i32
    %c0_i32_1 = arith.constant 0 : i32
    return %c0_i32, %c0_i32_0 : i32, i32
  }
  func.func @transform_3(%arg0: i32) -> (i32, i32) {
    %c0_i32 = arith.constant 0 : i32
    %c0_i32_0 = arith.constant 0 : i32
    %c0_i32_1 = arith.constant 0 : i32
    return %c0_i32, %c0_i32_0 : i32, i32
  }
  func.func @transform_4(%arg0: i32) -> (i32, i32, i32) {
    %c0_i32 = arith.constant 0 : i32
    %c0_i32_0 = arith.constant 0 : i32
    %c0_i32_1 = arith.constant 0 : i32
    %c0_i32_2 = arith.constant 0 : i32
    return %c0_i32, %c0_i32_0, %c0_i32_1 : i32, i32, i32
  }
}

</mosaic_0001>

<bundles_post_ra>
// kernel: tpu_custom_call.1
= control target key start
LH: loop header
LB: loop body
LE: loop exit
PB: predicated region body
PF: predicated region fallthrough
CT: control target
= control target key end

     0   :  { %vm302_vm0 = vcmask 261120   ;;  %vm21_vm1 = vcmask 7168   ;;  %vm796_vm2 = vcmask 556032   ;;  %s3038_s0 = inlined_call_operand.vmem [shape: f32[1,672,196], index: 0, kind: input, shape index: {}]   ;;  %s3039_s1 = inlined_call_operand.vmem [shape: f32[112,672], index: 1, kind: input, shape index: {}]   ;;  %s3040_s2 = inlined_call_operand.vmem [shape: f32[112,1], index: 2, kind: input, shape index: {}]   ;;  %s3041_s3 = inlined_call_operand.vmem [shape: f32[112,1], index: 3, kind: input, shape index: {}]   ;;  %s3042_s4 = inlined_call_operand.vmem [shape: f32[1,112,196], index: 4, kind: output, shape index: {}]  }
   0x1   :  { %v135_v0 = vld [vmem:[%s3038_s0 + $0x8] sm:$0xff]  ;;  %v137_v1 = vld [vmem:[%s3038_s0 + $0x18] sm:$0xff]  ;;  %v134_v5 = vld [vmem:[%s3038_s0] sm:$0xff] }
   0x2   :  { %v199_v2 = vld [vmem:[%s3038_s0 + $0x208] sm:$0xff]  ;;  %v1518_v3 = vpack.c.bf16 %v137_v1, %v135_v0  ;;  %v201_v4 = vld [vmem:[%s3038_s0 + $0x218] sm:$0xff]  ;;  %v136_v6 = vld [vmem:[%s3038_s0 + $0x10] sm:$0xff] }
   0x3   :  { %v1582_v7 = vpack.c.bf16 %v201_v4, %v199_v2  ;;  %v1520_v8 = vpack.c.bf16 %v136_v6, %v134_v5  ;;  %v198_v9 = vld [vmem:[%s3038_s0 + $0x200] sm:$0xff]  ;;  %v200_v10 = vld [vmem:[%s3038_s0 + $0x210] sm:$0xff]  ;;  %v139_v11 = vld [vmem:[%s3038_s0 + $0x28] sm:$0xff] }
   0x4   :  { %1519 = vmatprep.subr.bf16.mxu1 %v1518_v3  ;;  %v1584_v12 = vpack.c.bf16 %v200_v10, %v198_v9  ;;  %v141_v13 = vld [vmem:[%s3038_s0 + $0x38] sm:$0xff]  ;;  %v203_v14 = vld [vmem:[%s3038_s0 + $0x228] sm:$0xff]  ;;  %v138_v18 = vld [vmem:[%s3038_s0 + $0x20] sm:$0xff] }
   0x5   :  { %v205_v15 = vld [vmem:[%s3038_s0 + $0x238] sm:$0xff]  ;;  %1583 = vmatprep.subr.bf16.mxu0 %v1582_v7  ;;  %1521 = vmatpush1.bf16.msra.mxu1 %v1520_v8  ;;  %v1522_v16 = vpack.c.bf16 %v141_v13, %v139_v11  ;;  %v140_v19 = vld [vmem:[%s3038_s0 + $0x30] sm:$0xff]  ;;  %v202_v20 = vld [vmem:[%s3038_s0 + $0x220] sm:$0xff] }
   0x6   :  { %v1586_v17 = vpack.c.bf16 %v205_v15, %v203_v14  ;;  %1585 = vmatpush1.bf16.msra.mxu0 %v1584_v12  ;;  %v1524_v21 = vpack.c.bf16 %v140_v19, %v138_v18  ;;  %v204_v22 = vld [vmem:[%s3038_s0 + $0x230] sm:$0xff]  ;;  %v143_v23 = vld [vmem:[%s3038_s0 + $0x48] sm:$0xff]  ;;  %v145_v24 = vld [vmem:[%s3038_s0 + $0x58] sm:$0xff] }
   0x7   :  { %1523 = vmatprep.subr.bf16.mxu1 %v1522_v16  ;;  %v1588_v25 = vpack.c.bf16 %v204_v22, %v202_v20  ;;  %v1526_v26 = vpack.c.bf16 %v145_v24, %v143_v23  ;;  %v207_v27 = vld [vmem:[%s3038_s0 + $0x248] sm:$0xff]  ;;  %v209_v28 = vld [vmem:[%s3038_s0 + $0x258] sm:$0xff]  ;;  %v142_v29 = vld [vmem:[%s3038_s0 + $0x40] sm:$0xff] }
   0x8   :  { %1587 = vmatprep.subr.bf16.mxu0 %v1586_v17  ;;  %v1590_v30 = vpack.c.bf16 %v209_v28, %v207_v27  ;;  %v144_v31 = vld [vmem:[%s3038_s0 + $0x50] sm:$0xff]  ;;  %v206_v32 = vld [vmem:[%s3038_s0 + $0x240] sm:$0xff]  ;;  %v147_v35 = vld [vmem:[%s3038_s0 + $0x68] sm:$0xff] }
   0x9   :  { %v208_v33 = vld [vmem:[%s3038_s0 + $0x250] sm:$0xff]  ;;  %1525 = vmatpush1.bf16.msra.mxu1 %v1524_v21  ;;  %v1528_v34 = vpack.c.bf16 %v144_v31, %v142_v29  ;;  %v149_v36 = vld [vmem:[%s3038_s0 + $0x78] sm:$0xff]  ;;  %v211_v37 = vld [vmem:[%s3038_s0 + $0x268] sm:$0xff] }
   0xa   :  { %1589 = vmatpush1.bf16.msra.mxu0 %v1588_v25  ;;  %1527 = vmatprep.subr.bf16.mxu1 %v1526_v26  ;;  %v1592_v38 = vpack.c.bf16 %v208_v33, %v206_v32  ;;  %v1530_v39 = vpack.c.bf16 %v149_v36, %v147_v35  ;;  %v213_v40 = vld [vmem:[%s3038_s0 + $0x278] sm:$0xff]  ;;  %v146_v41 = vld [vmem:[%s3038_s0 + $0x60] sm:$0xff]  ;;  %v148_v42 = vld [vmem:[%s3038_s0 + $0x70] sm:$0xff] }
   0xb   :  { %1591 = vmatprep.subr.bf16.mxu0 %v1590_v30  ;;  %v1594_v43 = vpack.c.bf16 %v213_v40, %v211_v37  ;;  %v210_v44 = vld [vmem:[%s3038_s0 + $0x260] sm:$0xff]  ;;  %v212_v45 = vld [vmem:[%s3038_s0 + $0x270] sm:$0xff]  ;;  %v151_v46 = vld [vmem:[%s3038_s0 + $0x88] sm:$0xff]  ;;  %v1532_v50 = vpack.c.bf16 %v148_v42, %v146_v41 }
   0xc   :  { %v153_v47 = vld [vmem:[%s3038_s0 + $0x98] sm:$0xff]  ;;  %v215_v48 = vld [vmem:[%s3038_s0 + $0x288] sm:$0xff]  ;;  %v1596_v51 = vpack.c.bf16 %v212_v45, %v210_v44  ;;  %v150_v53 = vld [vmem:[%s3038_s0 + $0x80] sm:$0xff] }
   0xd   :  { %v217_v49 = vld [vmem:[%s3038_s0 + $0x298] sm:$0xff]  ;;  %1529 = vmatpush1.bf16.msra.mxu1 %v1528_v34  ;;  %v1534_v52 = vpack.c.bf16 %v153_v47, %v151_v46  ;;  %v152_v54 = vld [vmem:[%s3038_s0 + $0x90] sm:$0xff]  ;;  %v214_v55 = vld [vmem:[%s3038_s0 + $0x280] sm:$0xff] }
   0xe   :  { %1593 = vmatpush1.bf16.msra.mxu0 %v1592_v38  ;;  %1531 = vmatprep.subr.bf16.mxu1 %v1530_v39  ;;  %v1598_v56 = vpack.c.bf16 %v217_v49, %v215_v48  ;;  %v216_v57 = vld [vmem:[%s3038_s0 + $0x290] sm:$0xff]  ;;  %v155_v58 = vld [vmem:[%s3038_s0 + $0xa8] sm:$0xff]  ;;  %v157_v59 = vld [vmem:[%s3038_s0 + $0xb8] sm:$0xff]  ;;  %v1536_v62 = vpack.c.bf16 %v152_v54, %v150_v53 }
   0xf   :  { %1595 = vmatprep.subr.bf16.mxu0 %v1594_v43  ;;  %v219_v60 = vld [vmem:[%s3038_s0 + $0x2a8] sm:$0xff]  ;;  %v221_v61 = vld [vmem:[%s3038_s0 + $0x2b8] sm:$0xff]  ;;  %v1600_v63 = vpack.c.bf16 %v216_v57, %v214_v55  ;;  %v1538_v0 = vpack.c.bf16 %v157_v59, %v155_v58  ;;  %v154_v1 = vld [vmem:[%s3038_s0 + $0xa0] sm:$0xff] }
  0x10   :  { %v156_v2 = vld [vmem:[%s3038_s0 + $0xb0] sm:$0xff]  ;;  %v218_v3 = vld [vmem:[%s3038_s0 + $0x2a0] sm:$0xff]  ;;  %v1602_v4 = vpack.c.bf16 %v221_v61, %v219_v60  ;;  %v159_v6 = vld [vmem:[%s3038_s0 + $0xc8] sm:$0xff] }
  0x11   :  { %1533 = vmatpush1.bf16.msra.mxu1 %v1532_v50  ;;  %v220_v5 = vld [vmem:[%s3038_s0 + $0x2b0] sm:$0xff]  ;;  %v161_v7 = vld [vmem:[%s3038_s0 + $0xd8] sm:$0xff]  ;;  %v223_v8 = vld [vmem:[%s3038_s0 + $0x2c8] sm:$0xff]  ;;  %v1540_v10 = vpack.c.bf16 %v156_v2, %v154_v1 }
  0x12   :  { %1597 = vmatpush1.bf16.msra.mxu0 %v1596_v51  ;;  %1535 = vmatprep.subr.bf16.mxu1 %v1534_v52  ;;  %v225_v9 = vld [vmem:[%s3038_s0 + $0x2d8] sm:$0xff]  ;;  %v1604_v11 = vpack.c.bf16 %v220_v5, %v218_v3  ;;  %v1542_v12 = vpack.c.bf16 %v161_v7, %v159_v6  ;;  %v158_v13 = vld [vmem:[%s3038_s0 + $0xc0] sm:$0xff]  ;;  %v160_v14 = vld [vmem:[%s3038_s0 + $0xd0] sm:$0xff] }
  0x13   :  { %1599 = vmatprep.subr.bf16.mxu0 %v1598_v56  ;;  %v222_v15 = vld [vmem:[%s3038_s0 + $0x2c0] sm:$0xff]  ;;  %v1606_v16 = vpack.c.bf16 %v225_v9, %v223_v8  ;;  %v224_v17 = vld [vmem:[%s3038_s0 + $0x2d0] sm:$0xff]  ;;  %v163_v18 = vld [vmem:[%s3038_s0 + $0xe8] sm:$0xff]  ;;  %v1544_v22 = vpack.c.bf16 %v160_v14, %v158_v13 }
  0x14   :  { %v165_v19 = vld [vmem:[%s3038_s0 + $0xf8] sm:$0xff]  ;;  %v227_v20 = vld [vmem:[%s3038_s0 + $0x2e8] sm:$0xff]  ;;  %v1608_v23 = vpack.c.bf16 %v224_v17, %v222_v15  ;;  %v162_v25 = vld [vmem:[%s3038_s0 + $0xe0] sm:$0xff] }
  0x15   :  { %1537 = vmatpush1.bf16.msra.mxu1 %v1536_v62  ;;  %v229_v21 = vld [vmem:[%s3038_s0 + $0x2f8] sm:$0xff]  ;;  %v1546_v24 = vpack.c.bf16 %v165_v19, %v163_v18  ;;  %v164_v26 = vld [vmem:[%s3038_s0 + $0xf0] sm:$0xff]  ;;  %v226_v27 = vld [vmem:[%s3038_s0 + $0x2e0] sm:$0xff] }
  0x16   :  { %1601 = vmatpush1.bf16.msra.mxu0 %v1600_v63  ;;  %1539 = vmatprep.subr.bf16.mxu1 %v1538_v0  ;;  %v1610_v28 = vpack.c.bf16 %v229_v21, %v227_v20  ;;  %v228_v29 = vld [vmem:[%s3038_s0 + $0x2f0] sm:$0xff]  ;;  %v167_v30 = vld [vmem:[%s3038_s0 + $0x108] sm:$0xff]  ;;  %v169_v31 = vld [vmem:[%s3038_s0 + $0x118] sm:$0xff]  ;;  %v1548_v34 = vpack.c.bf16 %v164_v26, %v162_v25 }
  0x17   :  { %1603 = vmatprep.subr.bf16.mxu0 %v1602_v4  ;;  %v231_v32 = vld [vmem:[%s3038_s0 + $0x308] sm:$0xff]  ;;  %v233_v33 = vld [vmem:[%s3038_s0 + $0x318] sm:$0xff]  ;;  %v1612_v35 = vpack.c.bf16 %v228_v29, %v226_v27  ;;  %v1550_v36 = vpack.c.bf16 %v169_v31, %v167_v30  ;;  %v166_v37 = vld [vmem:[%s3038_s0 + $0x100] sm:$0xff] }
  0x18   :  { %v168_v38 = vld [vmem:[%s3038_s0 + $0x110] sm:$0xff]  ;;  %v230_v39 = vld [vmem:[%s3038_s0 + $0x300] sm:$0xff]  ;;  %v1614_v40 = vpack.c.bf16 %v233_v33, %v231_v32  ;;  %v171_v42 = vld [vmem:[%s3038_s0 + $0x128] sm:$0xff] }
  0x19   :  { %1541 = vmatpush1.bf16.msra.mxu1 %v1540_v10  ;;  %v232_v41 = vld [vmem:[%s3038_s0 + $0x310] sm:$0xff]  ;;  %v173_v43 = vld [vmem:[%s3038_s0 + $0x138] sm:$0xff]  ;;  %v235_v44 = vld [vmem:[%s3038_s0 + $0x328] sm:$0xff]  ;;  %v1552_v46 = vpack.c.bf16 %v168_v38, %v166_v37 }
  0x1a   :  { %1605 = vmatpush1.bf16.msra.mxu0 %v1604_v11  ;;  %1543 = vmatprep.subr.bf16.mxu1 %v1542_v12  ;;  %v237_v45 = vld [vmem:[%s3038_s0 + $0x338] sm:$0xff]  ;;  %v1616_v47 = vpack.c.bf16 %v232_v41, %v230_v39  ;;  %v1554_v48 = vpack.c.bf16 %v173_v43, %v171_v42  ;;  %v170_v49 = vld [vmem:[%s3038_s0 + $0x120] sm:$0xff]  ;;  %v172_v50 = vld [vmem:[%s3038_s0 + $0x130] sm:$0xff] }
  0x1b   :  { %1607 = vmatprep.subr.bf16.mxu0 %v1606_v16  ;;  %v234_v51 = vld [vmem:[%s3038_s0 + $0x320] sm:$0xff]  ;;  %v1618_v52 = vpack.c.bf16 %v237_v45, %v235_v44  ;;  %v236_v53 = vld [vmem:[%s3038_s0 + $0x330] sm:$0xff]  ;;  %v175_v54 = vld [vmem:[%s3038_s0 + $0x148] sm:$0xff]  ;;  %v1556_v58 = vpack.c.bf16 %v172_v50, %v170_v49 }
  0x1c   :  { %v177_v55 = vld [vmem:[%s3038_s0 + $0x158] sm:$0xff]  ;;  %v239_v56 = vld [vmem:[%s3038_s0 + $0x348] sm:$0xff]  ;;  %v1620_v59 = vpack.c.bf16 %v236_v53, %v234_v51  ;;  %v174_v61 = vld [vmem:[%s3038_s0 + $0x140] sm:$0xff] }
  0x1d   :  { %1545 = vmatpush1.bf16.msra.mxu1 %v1544_v22  ;;  %v241_v57 = vld [vmem:[%s3038_s0 + $0x358] sm:$0xff]  ;;  %v1558_v60 = vpack.c.bf16 %v177_v55, %v175_v54  ;;  %v176_v62 = vld [vmem:[%s3038_s0 + $0x150] sm:$0xff]  ;;  %v238_v63 = vld [vmem:[%s3038_s0 + $0x340] sm:$0xff] }
  0x1e   :  { %1609 = vmatpush1.bf16.msra.mxu0 %v1608_v23  ;;  %1547 = vmatprep.subr.bf16.mxu1 %v1546_v24  ;;  %v1622_v0 = vpack.c.bf16 %v241_v57, %v239_v56  ;;  %v240_v1 = vld [vmem:[%s3038_s0 + $0x350] sm:$0xff]  ;;  %v179_v2 = vld [vmem:[%s3038_s0 + $0x168] sm:$0xff]  ;;  %v181_v3 = vld [vmem:[%s3038_s0 + $0x178] sm:$0xff]  ;;  %v1560_v6 = vpack.c.bf16 %v176_v62, %v174_v61 }
  0x1f   :  { %1611 = vmatprep.subr.bf16.mxu0 %v1610_v28  ;;  %v243_v4 = vld [vmem:[%s3038_s0 + $0x368] sm:$0xff]  ;;  %v245_v5 = vld [vmem:[%s3038_s0 + $0x378] sm:$0xff]  ;;  %v178_v7 = vld [vmem:[%s3038_s0 + $0x160] sm:$0xff]  ;;  %v1624_v8 = vpack.c.bf16 %v240_v1, %v238_v63  ;;  %v1562_v9 = vpack.c.bf16 %v181_v3, %v179_v2 }
  0x20   :  { %v180_v10 = vld [vmem:[%s3038_s0 + $0x170] sm:$0xff]  ;;  %v242_v11 = vld [vmem:[%s3038_s0 + $0x360] sm:$0xff]  ;;  %v1626_v13 = vpack.c.bf16 %v245_v5, %v243_v4  ;;  %v183_v14 = vld [vmem:[%s3038_s0 + $0x188] sm:$0xff] }
  0x21   :  { %1549 = vmatpush1.bf16.msra.mxu1 %v1548_v34  ;;  %v244_v12 = vld [vmem:[%s3038_s0 + $0x370] sm:$0xff]  ;;  %v185_v15 = vld [vmem:[%s3038_s0 + $0x198] sm:$0xff]  ;;  %v51_v16 = vld [vmem:[%s3039_s1 + $0x8] sm:$0xff]  ;;  %v1564_v20 = vpack.c.bf16 %v180_v10, %v178_v7 }
  0x22   :  { %1613 = vmatpush1.bf16.msra.mxu0 %v1612_v35  ;;  %1551 = vmatprep.subr.bf16.mxu1 %v1550_v36  ;;  %v247_v17 = vld [vmem:[%s3038_s0 + $0x388] sm:$0xff]  ;;  %v249_v18 = vld [vmem:[%s3038_s0 + $0x398] sm:$0xff]  ;;  %v1628_v21 = vpack.c.bf16 %v244_v12, %v242_v11  ;;  %v1566_v22 = vpack.c.bf16 %v185_v15, %v183_v14  ;;  %v182_v23 = vld [vmem:[%s3038_s0 + $0x180] sm:$0xff] }
  0x23   :  { %1615 = vmatprep.subr.bf16.mxu0 %v1614_v40  ;;  %409 = vmatprep.mubr.f32.mxu1 %v51_v16  ;;  %v53_v19 = vld [vmem:[%s3039_s1 + $0x18] sm:$0xff]  ;;  %v184_v24 = vld [vmem:[%s3038_s0 + $0x190] sm:$0xff]  ;;  %v246_v25 = vld [vmem:[%s3038_s0 + $0x380] sm:$0xff]  ;;  %v1630_v26 = vpack.c.bf16 %v249_v18, %v247_v17 }
  0x24   :  { %558 = vmatprep.mubr.f32.mxu0 %v53_v19  ;;  %v248_v27 = vld [vmem:[%s3038_s0 + $0x390] sm:$0xff]  ;;  %v187_v28 = vld [vmem:[%s3038_s0 + $0x1a8] sm:$0xff]  ;;  %v189_v29 = vld [vmem:[%s3038_s0 + $0x1b8] sm:$0xff]  ;;  %v1568_v32 = vpack.c.bf16 %v184_v24, %v182_v23 }
  0x25   :  { %1553 = vmatpush1.bf16.msra.mxu1 %v1552_v46  ;;  %v251_v30 = vld [vmem:[%s3038_s0 + $0x3a8] sm:$0xff]  ;;  %v253_v31 = vld [vmem:[%s3038_s0 + $0x3b8] sm:$0xff]  ;;  %v1632_v33 = vpack.c.bf16 %v248_v27, %v246_v25  ;;  %v1570_v34 = vpack.c.bf16 %v189_v29, %v187_v28  ;;  %v186_v35 = vld [vmem:[%s3038_s0 + $0x1a0] sm:$0xff] }
  0x26   :  { %1617 = vmatpush1.bf16.msra.mxu0 %v1616_v47  ;;  %1555 = vmatprep.subr.bf16.mxu1 %v1554_v48  ;;  %v188_v36 = vld [vmem:[%s3038_s0 + $0x1b0] sm:$0xff]  ;;  %v250_v37 = vld [vmem:[%s3038_s0 + $0x3a0] sm:$0xff]  ;;  %v1634_v38 = vpack.c.bf16 %v253_v31, %v251_v30  ;;  %v191_v40 = vld [vmem:[%s3038_s0 + $0x1c8] sm:$0xff] }
  0x27   :  { %1619 = vmatprep.subr.bf16.mxu0 %v1618_v52  ;;  %v252_v39 = vld [vmem:[%s3038_s0 + $0x3b0] sm:$0xff]  ;;  %v193_v41 = vld [vmem:[%s3038_s0 + $0x1d8] sm:$0xff]  ;;  %v255_v42 = vld [vmem:[%s3038_s0 + $0x3c8] sm:$0xff]  ;;  %v1572_v44 = vpack.c.bf16 %v188_v36, %v186_v35 }
  0x28   :  { %v257_v43 = vld [vmem:[%s3038_s0 + $0x3d8] sm:$0xff]  ;;  %v1636_v45 = vpack.c.bf16 %v252_v39, %v250_v37  ;;  %v1574_v46 = vpack.c.bf16 %v193_v41, %v191_v40  ;;  %v190_v47 = vld [vmem:[%s3038_s0 + $0x1c0] sm:$0xff]  ;;  %v192_v48 = vld [vmem:[%s3038_s0 + $0x1d0] sm:$0xff] }
  0x29   :  { %1557 = vmatpush1.bf16.msra.mxu1 %v1556_v58  ;;  %v254_v49 = vld [vmem:[%s3038_s0 + $0x3c0] sm:$0xff]  ;;  %v1638_v50 = vpack.c.bf16 %v257_v43, %v255_v42  ;;  %v256_v51 = vld [vmem:[%s3038_s0 + $0x3d0] sm:$0xff]  ;;  %v195_v52 = vld [vmem:[%s3038_s0 + $0x1e8] sm:$0xff]  ;;  %v1576_v56 = vpack.c.bf16 %v192_v48, %v190_v47 }
  0x2a   :  { %1621 = vmatpush1.bf16.msra.mxu0 %v1620_v59  ;;  %1559 = vmatprep.subr.bf16.mxu1 %v1558_v60  ;;  %v197_v53 = vld [vmem:[%s3038_s0 + $0x1f8] sm:$0xff]  ;;  %v259_v54 = vld [vmem:[%s3038_s0 + $0x3e8] sm:$0xff]  ;;  %v1640_v57 = vpack.c.bf16 %v256_v51, %v254_v49  ;;  %v194_v59 = vld [vmem:[%s3038_s0 + $0x1e0] sm:$0xff] }
  0x2b   :  { %1623 = vmatprep.subr.bf16.mxu0 %v1622_v0  ;;  %v261_v55 = vld [vmem:[%s3038_s0 + $0x3f8] sm:$0xff]  ;;  %v1578_v58 = vpack.c.bf16 %v197_v53, %v195_v52  ;;  %v196_v60 = vld [vmem:[%s3038_s0 + $0x1f0] sm:$0xff]  ;;  %v258_v61 = vld [vmem:[%s3038_s0 + $0x3e0] sm:$0xff] }
  0x2c   :  { %v1642_v62 = vpack.c.bf16 %v261_v55, %v259_v54  ;;  %v260_v63 = vld [vmem:[%s3038_s0 + $0x3f0] sm:$0xff]  ;;  %v263_v0 = vld [vmem:[%s3038_s0 + $0x408] sm:$0xff]  ;;  %v265_v1 = vld [vmem:[%s3038_s0 + $0x418] sm:$0xff]  ;;  %v1580_v2 = vpack.c.bf16 %v196_v60, %v194_v59 }
  0x2d   :  { %1561 = vmatpush1.bf16.msra.mxu1 %v1560_v6  ;;  %v1644_v3 = vpack.c.bf16 %v260_v63, %v258_v61  ;;  %v1646_v4 = vpack.c.bf16 %v265_v1, %v263_v0  ;;  %v262_v5 = vld [vmem:[%s3038_s0 + $0x400] sm:$0xff]  ;;  %v264_v6 = vld [vmem:[%s3038_s0 + $0x410] sm:$0xff]  ;;  %v267_v7 = vld [vmem:[%s3038_s0 + $0x428] sm:$0xff] }
  0x2e   :  { %1625 = vmatpush1.bf16.msra.mxu0 %v1624_v8  ;;  %1563 = vmatprep.subr.bf16.mxu1 %v1562_v9  ;;  %v269_v8 = vld [vmem:[%s3038_s0 + $0x438] sm:$0xff]  ;;  %v50_v9 = vld [vmem:[%s3039_s1] sm:$0xff]  ;;  %v52_v10 = vld [vmem:[%s3039_s1 + $0x10] sm:$0xff]  ;;  %v1648_v11 = vpack.c.bf16 %v264_v6, %v262_v5 }
  0x2f   :  { %1627 = vmatprep.subr.bf16.mxu0 %v1626_v13  ;;  %v57_v12 = vld [vmem:[%s3039_s1 + $0x38] sm:$0xff]  ;;  %v59_v13 = vld [vmem:[%s3039_s1 + $0x48] sm:$0xff]  ;;  %v1650_v14 = vpack.c.bf16 %v269_v8, %v267_v7  ;;  %v266_v15 = vld [vmem:[%s3038_s0 + $0x420] sm:$0xff] }
  0x30   :  { %v268_v16 = vld [vmem:[%s3038_s0 + $0x430] sm:$0xff]  ;;  %v271_v17 = vld [vmem:[%s3038_s0 + $0x448] sm:$0xff]  ;;  %v273_v18 = vld [vmem:[%s3038_s0 + $0x458] sm:$0xff] }
  0x31   :  { %1565 = vmatpush1.bf16.msra.mxu1 %v1564_v20  ;;  %v56_v19 = vld [vmem:[%s3039_s1 + $0x30] sm:$0xff]  ;;  %v58_v20 = vld [vmem:[%s3039_s1 + $0x40] sm:$0xff]  ;;  %v65_v23 = vld [vmem:[%s3039_s1 + $0x78] sm:$0xff]  ;;  %v1654_v24 = vpack.c.bf16 %v273_v18, %v271_v17 }
  0x32   :  { %1629 = vmatpush1.bf16.msra.mxu0 %v1628_v21  ;;  %1567 = vmatprep.subr.bf16.mxu1 %v1566_v22  ;;  %v63_v21 = vld [vmem:[%s3039_s1 + $0x68] sm:$0xff]  ;;  %v1652_v22 = vpack.c.bf16 %v268_v16, %v266_v15  ;;  %v270_v25 = vld [vmem:[%s3038_s0 + $0x440] sm:$0xff]  ;;  %v277_v28 = vld [vmem:[%s3038_s0 + $0x478] sm:$0xff] }
  0x33   :  { %1631 = vmatprep.subr.bf16.mxu0 %v1630_v26  ;;  %v272_v26 = vld [vmem:[%s3038_s0 + $0x450] sm:$0xff]  ;;  %v275_v27 = vld [vmem:[%s3038_s0 + $0x468] sm:$0xff]  ;;  %v62_v29 = vld [vmem:[%s3039_s1 + $0x60] sm:$0xff] }
  0x34   :  { %v64_v30 = vld [vmem:[%s3039_s1 + $0x70] sm:$0xff]  ;;  %v69_v31 = vld [vmem:[%s3039_s1 + $0x98] sm:$0xff]  ;;  %v274_v35 = vld [vmem:[%s3038_s0 + $0x460] sm:$0xff] }
  0x35   :  { %1569 = vmatpush1.bf16.msra.mxu1 %v1568_v32  ;;  %v1656_v32 = vpack.c.bf16 %v272_v26, %v270_v25  ;;  %v276_v36 = vld [vmem:[%s3038_s0 + $0x470] sm:$0xff]  ;;  %v279_v37 = vld [vmem:[%s3038_s0 + $0x488] sm:$0xff]  ;;  %v70_v40 = vld [vmem:[%s3039_s1 + $0xa0] sm:$0xff] }
  0x36   :  { %1633 = vmatpush1.bf16.msra.mxu0 %v1632_v33  ;;  %1571 = vmatprep.subr.bf16.mxu1 %v1570_v34  ;;  %v71_v33 = vld [vmem:[%s3039_s1 + $0xa8] sm:$0xff]  ;;  %v1658_v34 = vpack.c.bf16 %v277_v28, %v275_v27  ;;  %v68_v39 = vld [vmem:[%s3039_s1 + $0x90] sm:$0xff]  ;;  %v1660_v42 = vpack.c.bf16 %v276_v36, %v274_v35  ;;  %v77_v43 = vld [vmem:[%s3039_s1 + $0xd8] sm:$0xff] }
  0x37   :  { %1635 = vmatprep.subr.bf16.mxu0 %v1634_v38  ;;  %v281_v38 = vld [vmem:[%s3038_s0 + $0x498] sm:$0xff]  ;;  %v75_v41 = vld [vmem:[%s3039_s1 + $0xc8] sm:$0xff]  ;;  %v74_v49 = vld [vmem:[%s3039_s1 + $0xc0] sm:$0xff] }
  0x38   :  { %v283_v47 = vld [vmem:[%s3038_s0 + $0x4a8] sm:$0xff]  ;;  %v285_v48 = vld [vmem:[%s3038_s0 + $0x4b8] sm:$0xff]  ;;  %v282_v55 = vld [vmem:[%s3038_s0 + $0x4a0] sm:$0xff] }
  0x39   :  { %1573 = vmatpush1.bf16.msra.mxu1 %v1572_v44  ;;  %v1662_v44 = vpack.c.bf16 %v281_v38, %v279_v37  ;;  %v81_v51 = vld [vmem:[%s3039_s1 + $0xf8] sm:$0xff]  ;;  %v83_v53 = vld [vmem:[%s3039_s1 + $0x108] sm:$0xff]  ;;  %v1666_v54 = vpack.c.bf16 %v285_v48, %v283_v47  ;;  %v80_v59 = vld [vmem:[%s3039_s1 + $0xf0] sm:$0xff] }
  0x3a   :  { %1637 = vmatpush1.bf16.msra.mxu0 %v1636_v45  ;;  %1575 = vmatprep.subr.bf16.mxu1 %v1574_v46  ;;  %v278_v45 = vld [vmem:[%s3038_s0 + $0x480] sm:$0xff]  ;;  %v280_v46 = vld [vmem:[%s3038_s0 + $0x490] sm:$0xff]  ;;  %v87_v61 = vld [vmem:[%s3039_s1 + $0x128] sm:$0xff] }
  0x3b   :  { %1639 = vmatprep.subr.bf16.mxu0 %v1638_v50  ;;  %v76_v50 = vld [vmem:[%s3039_s1 + $0xd0] sm:$0xff]  ;;  %v1664_v52 = vpack.c.bf16 %v280_v46, %v278_v45  ;;  %v82_v60 = vld [vmem:[%s3039_s1 + $0x100] sm:$0xff]  ;;  %v89_v63 = vld [vmem:[%s3039_s1 + $0x138] sm:$0xff] }
  0x3c   :  { %v286_v1 = vld [vmem:[%s3038_s0 + $0x4c0] sm:$0xff]  ;;  %v88_v6 = vld [vmem:[%s3039_s1 + $0x130] sm:$0xff]  ;;  %v93_v7 = vld [vmem:[%s3039_s1 + $0x158] sm:$0xff] }
  0x3d   :  { %1577 = vmatpush1.bf16.msra.mxu1 %v1576_v56  ;;  %v284_v56 = vld [vmem:[%s3038_s0 + $0x4b0] sm:$0xff]  ;;  %v86_v5 = vld [vmem:[%s3039_s1 + $0x120] sm:$0xff]  ;;  %v99_v17 = vld [vmem:[%s3039_s1 + $0x188] sm:$0xff] }
  0x3e   :  { %1641 = vmatpush1.bf16.msra.mxu0 %v1640_v57  ;;  %1579 = vmatprep.subr.bf16.mxu1 %v1578_v58  ;;  %v287_v57 = vld [vmem:[%s3038_s0 + $0x4c8] sm:$0xff]  ;;  %v289_v58 = vld [vmem:[%s3038_s0 + $0x4d8] sm:$0xff]  ;;  %v92_v15 = vld [vmem:[%s3039_s1 + $0x150] sm:$0xff] }
  0x3f   :  { %1643 = vmatprep.subr.bf16.mxu0 %v1642_v62  ;;  %v1668_v62 = vpack.c.bf16 %v284_v56, %v282_v55  ;;  %v1670_v0 = vpack.c.bf16 %v289_v58, %v287_v57  ;;  %v94_v16 = vld [vmem:[%s3039_s1 + $0x160] sm:$0xff]  ;;  %v100_v26 = vld [vmem:[%s3039_s1 + $0x190] sm:$0xff]  ;;  %v105_v27 = vld [vmem:[%s3039_s1 + $0x1b8] sm:$0xff] }
  0x40   :  { %v98_v25 = vld [vmem:[%s3039_s1 + $0x180] sm:$0xff]  ;;  %v111_v35 = vld [vmem:[%s3039_s1 + $0x1e8] sm:$0xff]  ;;  %v113_v37 = vld [vmem:[%s3039_s1 + $0x1f8] sm:$0xff] }
  0x41   :  { %1581 = vmatpush1.bf16.msra.mxu1 %v1580_v2  ;;  %v288_v2 = vld [vmem:[%s3038_s0 + $0x4d0] sm:$0xff]  ;;  %v110_v38 = vld [vmem:[%s3039_s1 + $0x1e0] sm:$0xff]  ;;  %v125_v45 = vld [vmem:[%s3039_s1 + $0x258] sm:$0xff] }
  0x42   :  { %1645 = vmatpush1.bf16.msra.mxu0 %v1644_v3  ;;  %1686 = vmatprep.subr.bf16.mxu1 %v1646_v4  ;;  %v291_v3 = vld [vmem:[%s3038_s0 + $0x4e8] sm:$0xff]  ;;  %v1672_v8 = vpack.c.bf16 %v288_v2, %v286_v1  ;;  %v122_v46 = vld [vmem:[%s3039_s1 + $0x240] sm:$0xff]  ;;  %v124_v47 = vld [vmem:[%s3039_s1 + $0x250] sm:$0xff] }
  0x43   :  { %1647 = vmatprep.subr.bf16.mxu0 %v1646_v4  ;;  %v293_v4 = vld [vmem:[%s3038_s0 + $0x4f8] sm:$0xff]  ;;  %v54_v55 = vld [vmem:[%s3039_s1 + $0x20] sm:$0xff]  ;;  %v103_v56 = vld [vmem:[%s3039_s1 + $0x1a8] sm:$0xff] }
  0x44   :  { %410 = vmatmul.mubr.f32.vlgmr.msra.gmra.mrb[0].mxu1 %v50_v9  ;;  %v95_v9 = vld [vmem:[%s3039_s1 + $0x168] sm:$0xff]  ;;  %v129_v48 = vld [vmem:[%s3039_s1 + $0x278] sm:$0xff]  ;;  %v102_v58 = vld [vmem:[%s3039_s1 + $0x1a0] sm:$0xff] }
  0x45   :  { %559 = vmatmul.mubr.f32.vlgmr.msra.gmra.mrb[0].mxu0 %v52_v10  ;;  %415 = vmatprep.mubr.f32.mxu1 %v57_v12  ;;  %v1674_v10 = vpack.c.bf16 %v293_v4, %v291_v3  ;;  %v292_v12 = vld [vmem:[%s3038_s0 + $0x4f0] sm:$0xff]  ;;  %v61_v57 = vld [vmem:[%s3039_s1 + $0x58] sm:$0xff]  ;;  %v114_v2 = vld [vmem:[%s3039_s1 + $0x200] sm:$0xff] }
  0x46   :  { %1649 = vmatpush1.bf16.msra.mxu0 %v1648_v11  ;;  %564 = vmatprep.mubr.f32.mxu0 %v59_v13  ;;  %v295_v13 = vld [vmem:[%s3038_s0 + $0x508] sm:$0xff]  ;;  %v73_v1 = vld [vmem:[%s3039_s1 + $0xb8] sm:$0xff]  ;;  %v72_v3 = vld [vmem:[%s3039_s1 + $0xb0] sm:$0xff] }
  0x47   :  { %1696 = vmatpush1.bf16.msra.mxu1 %v1648_v11  ;;  %1651 = vmatprep.subr.bf16.mxu0 %v1650_v14  ;;  %v290_v11 = vld [vmem:[%s3038_s0 + $0x4e0] sm:$0xff]  ;;  %v121_v4 = vld [vmem:[%s3039_s1 + $0x238] sm:$0xff] }
  0x48   :  { %416 = vmatmul.mubr.f32.gmra.mrb[2].mxu1 %v56_v19  ;;  %1687 = vmatprep.subr.bf16.mxu1 %v1650_v14  ;;  %v297_v14 = vld [vmem:[%s3038_s0 + $0x518] sm:$0xff]  ;;  %v1676_v18 = vpack.c.bf16 %v292_v12, %v290_v11  ;;  %v84_v11 = vld [vmem:[%s3039_s1 + $0x110] sm:$0xff] }
  0x49   :  { %565 = vmatmul.mubr.f32.gmra.mrb[2].mxu0 %v58_v20  ;;  %421 = vmatprep.mubr.f32.mxu1 %v63_v21  ;;  %v101_v19 = vld [vmem:[%s3039_s1 + $0x198] sm:$0xff]  ;;  %v1678_v20 = vpack.c.bf16 %v297_v14, %v295_v13  ;;  %v294_v21 = vld [vmem:[%s3038_s0 + $0x500] sm:$0xff]  ;;  %v91_v13 = vld [vmem:[%s3039_s1 + $0x148] sm:$0xff] }
  0x4a   :  { %570 = vmatprep.mubr.f32.mxu0 %v65_v23  ;;  %1653 = vmatpush1.bf16.msra.mxu0 %v1652_v22  ;;  %v299_v23 = vld [vmem:[%s3038_s0 + $0x528] sm:$0xff]  ;;  %v133_v12 = vld [vmem:[%s3039_s1 + $0x298] sm:$0xff]  ;;  %v132_v14 = vld [vmem:[%s3039_s1 + $0x290] sm:$0xff] }
  0x4b   :  { %1697 = vmatpush1.bf16.msra.mxu1 %v1652_v22  ;;  %1655 = vmatprep.subr.bf16.mxu0 %v1654_v24  ;;  %v296_v22 = vld [vmem:[%s3038_s0 + $0x510] sm:$0xff] }
  0x4c   :  { %422 = vmatmul.mubr.f32.gmra.mrb[4].mxu1 %v62_v29  ;;  %1688 = vmatprep.subr.bf16.mxu1 %v1654_v24  ;;  %v301_v24 = vld [vmem:[%s3038_s0 + $0x538] sm:$0xff]  ;;  %v1680_v28 = vpack.c.bf16 %v296_v22, %v294_v21  ;;  %v107_v29 = vld [vmem:[%s3039_s1 + $0x1c8] sm:$0xff] }
  0x4d   :  { %571 = vmatmul.mubr.f32.gmra.mrb[4].mxu0 %v64_v30  ;;  %427 = vmatprep.mubr.f32.mxu1 %v69_v31  ;;  %v1682_v30 = vpack.c.bf16 %v301_v24, %v299_v23  ;;  %v298_v31 = vld [vmem:[%s3038_s0 + $0x520] sm:$0xff] }
  0x4e   :  { %576 = vmatprep.mubr.f32.mxu0 %v71_v33  ;;  %1657 = vmatpush1.bf16.msra.mxu0 %v1656_v32  ;;  %v104_v33 = vld [vmem:[%s3039_s1 + $0x1b0] sm:$0xff] }
  0x4f   :  { %1698 = vmatpush1.bf16.msra.mxu1 %v1656_v32  ;;  %1659 = vmatprep.subr.bf16.mxu0 %v1658_v34  ;;  %v300_v32 = vld [vmem:[%s3038_s0 + $0x530] sm:$0xff] }
  0x50   :  { %428 = vmatmul.mubr.f32.gmra.mrb[6].mxu1 %v68_v39  ;;  %1689 = vmatprep.subr.bf16.mxu1 %v1658_v34  ;;  %v106_v34 = vld [vmem:[%s3039_s1 + $0x1c0] sm:$0xff]  ;;  %v1684_v36 = vpack.c.bf16 %v300_v32, %v298_v31  ;;  %v112_v39 = vld [vmem:[%s3039_s1 + $0x1f0] sm:$0xff] }
  0x51   :  { %577 = vmatmul.mubr.f32.gmra.mrb[6].mxu0 %v70_v40  ;;  %433 = vmatprep.mubr.f32.mxu1 %v75_v41  ;;  %v117_v40 = vld [vmem:[%s3039_s1 + $0x218] sm:$0xff]  ;;  %v119_v41 = vld [vmem:[%s3039_s1 + $0x228] sm:$0xff] }
  0x52   :  { %582 = vmatprep.mubr.f32.mxu0 %v77_v43  ;;  %1661 = vmatpush1.bf16.msra.mxu0 %v1660_v42  ;;  %v118_v43 = vld [vmem:[%s3039_s1 + $0x220] sm:$0xff] }
  0x53   :  { %1699 = vmatpush1.bf16.msra.mxu1 %v1660_v42  ;;  %1663 = vmatprep.subr.bf16.mxu0 %v1662_v44  ;;  %v116_v42 = vld [vmem:[%s3039_s1 + $0x210] sm:$0xff] }
  0x54   :  { %434 = vmatmul.mubr.f32.gmra.mrb[8].mxu1 %v74_v49  ;;  %1690 = vmatprep.subr.bf16.mxu1 %v1662_v44  ;;  %v123_v44 = vld [vmem:[%s3039_s1 + $0x248] sm:$0xff] }
  0x55   :  { %583 = vmatmul.mubr.f32.gmra.mrb[8].mxu0 %v76_v50  ;;  %439 = vmatprep.mubr.f32.mxu1 %v81_v51  ;;  %v131_v49 = vld [vmem:[%s3039_s1 + $0x288] sm:$0xff]  ;;  %v128_v50 = vld [vmem:[%s3039_s1 + $0x270] sm:$0xff]  ;;  %v130_v51 = vld [vmem:[%s3039_s1 + $0x280] sm:$0xff] }
  0x56   :  { %588 = vmatprep.mubr.f32.mxu0 %v83_v53  ;;  %1665 = vmatpush1.bf16.msra.mxu0 %v1664_v52  ;;  %v55_v53 = vld [vmem:[%s3039_s1 + $0x28] sm:$0xff] }
  0x57   :  { %1700 = vmatpush1.bf16.msra.mxu1 %v1664_v52  ;;  %1667 = vmatprep.subr.bf16.mxu0 %v1666_v54  ;;  %v97_v52 = vld [vmem:[%s3039_s1 + $0x178] sm:$0xff] }
  0x58   :  { %440 = vmatmul.mubr.f32.gmra.mrb[10].mxu1 %v80_v59  ;;  %1691 = vmatprep.subr.bf16.mxu1 %v1666_v54  ;;  %v96_v54 = vld [vmem:[%s3039_s1 + $0x170] sm:$0xff] }
  0x59   :  { %589 = vmatmul.mubr.f32.gmra.mrb[10].mxu0 %v82_v60  ;;  %445 = vmatprep.mubr.f32.mxu1 %v87_v61  ;;  %v60_v59 = vld [vmem:[%s3039_s1 + $0x50] sm:$0xff]  ;;  %v109_v60 = vld [vmem:[%s3039_s1 + $0x1d8] sm:$0xff]  ;;  %v67_v61 = vld [vmem:[%s3039_s1 + $0x88] sm:$0xff] }
  0x5a   :  { %594 = vmatprep.mubr.f32.mxu0 %v89_v63  ;;  %1669 = vmatpush1.bf16.msra.mxu0 %v1668_v62  ;;  %v66_v63 = vld [vmem:[%s3039_s1 + $0x80] sm:$0xff] }
  0x5b   :  { %1701 = vmatpush1.bf16.msra.mxu1 %v1668_v62  ;;  %1671 = vmatprep.subr.bf16.mxu0 %v1670_v0  ;;  %v108_v62 = vld [vmem:[%s3039_s1 + $0x1d0] sm:$0xff] }
  0x5c   :  { %446 = vmatmul.mubr.f32.gmra.mrb[12].mxu1 %v86_v5  ;;  %1692 = vmatprep.subr.bf16.mxu1 %v1670_v0  ;;  %v115_v0 = vld [vmem:[%s3039_s1 + $0x208] sm:$0xff] }
  0x5d   :  { %595 = vmatmul.mubr.f32.gmra.mrb[12].mxu0 %v88_v6  ;;  %451 = vmatprep.mubr.f32.mxu1 %v93_v7  ;;  %v79_v5 = vld [vmem:[%s3039_s1 + $0xe8] sm:$0xff]  ;;  %v120_v6 = vld [vmem:[%s3039_s1 + $0x230] sm:$0xff]  ;;  %v78_v7 = vld [vmem:[%s3039_s1 + $0xe0] sm:$0xff] }
  0x5e   :  { %600 = vmatprep.mubr.f32.mxu0 %v95_v9  ;;  %1673 = vmatpush1.bf16.msra.mxu0 %v1672_v8  ;;  %v85_v9 = vld [vmem:[%s3039_s1 + $0x118] sm:$0xff] }
  0x5f   :  { %1702 = vmatpush1.bf16.msra.mxu1 %v1672_v8  ;;  %1675 = vmatprep.subr.bf16.mxu0 %v1674_v10  ;;  %v127_v8 = vld [vmem:[%s3039_s1 + $0x268] sm:$0xff] }
  0x60   :  { %452 = vmatmul.mubr.f32.gmra.mrb[14].mxu1 %v92_v15  ;;  %1693 = vmatprep.subr.bf16.mxu1 %v1674_v10  ;;  %v126_v10 = vld [vmem:[%s3039_s1 + $0x260] sm:$0xff] }
  0x61   :  { %601 = vmatmul.mubr.f32.gmra.mrb[14].mxu0 %v94_v16  ;;  %457 = vmatprep.mubr.f32.mxu1 %v99_v17  ;;  %v90_v15 = vld [vmem:[%s3039_s1 + $0x140] sm:$0xff]  ;;  %v1794_v16 = vmov 0.0  }
  0x62   :  { %606 = vmatprep.mubr.f32.mxu0 %v101_v19  ;;  %1677 = vmatpush1.bf16.msra.mxu0 %v1676_v18  ;;  %22 = vst.msk [vmem:[#allocation3] sm:$0xff] %vm21_vm1, %v1794_v16  ;;  %23 = vst.msk [vmem:[#allocation3 + $0x8] sm:$0xff] %vm21_vm1, %v1794_v16 }
  0x63   :  { %1703 = vmatpush1.bf16.msra.mxu1 %v1676_v18  ;;  %1679 = vmatprep.subr.bf16.mxu0 %v1678_v20  ;;  %24 = vst.msk [vmem:[#allocation3 + $0x10] sm:$0xff] %vm21_vm1, %v1794_v16  ;;  %25 = vst.msk [vmem:[#allocation3 + $0x18] sm:$0xff] %vm21_vm1, %v1794_v16 }
  0x64   :  { %458 = vmatmul.mubr.f32.gmra.mrb[16].mxu1 %v98_v25  ;;  %1694 = vmatprep.subr.bf16.mxu1 %v1678_v20  ;;  %26 = vst.msk [vmem:[#allocation3 + $0x20] sm:$0xff] %vm21_vm1, %v1794_v16  ;;  %27 = vst.msk [vmem:[#allocation3 + $0x28] sm:$0xff] %vm21_vm1, %v1794_v16 }
  0x65   :  { %607 = vmatmul.mubr.f32.gmra.mrb[16].mxu0 %v100_v26  ;;  %463 = vmatprep.mubr.f32.mxu1 %v105_v27  ;;  %28 = vst.msk [vmem:[#allocation3 + $0x30] sm:$0xff] %vm21_vm1, %v1794_v16  ;;  %29 = vst.msk [vmem:[#allocation3 + $0x38] sm:$0xff] %vm21_vm1, %v1794_v16 }
  0x66   :  { %612 = vmatprep.mubr.f32.mxu0 %v107_v29  ;;  %1681 = vmatpush1.bf16.msra.mxu0 %v1680_v28  ;;  %30 = vst.msk [vmem:[#allocation3 + $0x40] sm:$0xff] %vm21_vm1, %v1794_v16  ;;  %31 = vst.msk [vmem:[#allocation3 + $0x48] sm:$0xff] %vm21_vm1, %v1794_v16 }
  0x67   :  { %1704 = vmatpush1.bf16.msra.mxu1 %v1680_v28  ;;  %1683 = vmatprep.subr.bf16.mxu0 %v1682_v30  ;;  %32 = vst.msk [vmem:[#allocation3 + $0x50] sm:$0xff] %vm21_vm1, %v1794_v16  ;;  %33 = vst.msk [vmem:[#allocation3 + $0x58] sm:$0xff] %vm21_vm1, %v1794_v16 }
  0x68   :  { %464 = vmatmul.mubr.f32.gmra.mrb[18].mxu1 %v104_v33  ;;  %1695 = vmatprep.subr.bf16.mxu1 %v1682_v30  ;;  %34 = vst.msk [vmem:[#allocation3 + $0x60] sm:$0xff] %vm21_vm1, %v1794_v16  ;;  %35 = vst.msk [vmem:[#allocation3 + $0x68] sm:$0xff] %vm21_vm1, %v1794_v16 }
  0x69   :  { %613 = vmatmul.mubr.f32.gmra.mrb[18].mxu0 %v106_v34  ;;  %469 = vmatprep.mubr.f32.mxu1 %v111_v35  ;;  %36 = vst.msk [vmem:[#allocation4] sm:$0xff] %vm21_vm1, %v1794_v16  ;;  %37 = vst.msk [vmem:[#allocation4 + $0x8] sm:$0xff] %vm21_vm1, %v1794_v16 }
  0x6a   :  { %618 = vmatprep.mubr.f32.mxu0 %v113_v37  ;;  %1685 = vmatpush1.bf16.msra.mxu0 %v1684_v36  ;;  %38 = vst.msk [vmem:[#allocation4 + $0x10] sm:$0xff] %vm21_vm1, %v1794_v16  ;;  %39 = vst.msk [vmem:[#allocation4 + $0x18] sm:$0xff] %vm21_vm1, %v1794_v16 }
  0x6b   :  { %1705 = vmatpush1.bf16.msra.mxu1 %v1684_v36  ;;  %40 = vst.msk [vmem:[#allocation4 + $0x20] sm:$0xff] %vm21_vm1, %v1794_v16  ;;  %41 = vst.msk [vmem:[#allocation4 + $0x28] sm:$0xff] %vm21_vm1, %v1794_v16 }
  0x6c   :  { %470 = vmatmul.mubr.f32.gmra.mrb[20].mxu1 %v110_v38  ;;  %42 = vst.msk [vmem:[#allocation4 + $0x30] sm:$0xff] %vm21_vm1, %v1794_v16  ;;  %43 = vst.msk [vmem:[#allocation4 + $0x38] sm:$0xff] %vm21_vm1, %v1794_v16 }
  0x6d   :  { %619 = vmatmul.mubr.f32.gmra.mrb[20].mxu0 %v112_v39  ;;  %475 = vmatprep.mubr.f32.mxu1 %v117_v40  ;;  %44 = vst.msk [vmem:[#allocation4 + $0x40] sm:$0xff] %vm21_vm1, %v1794_v16  ;;  %45 = vst.msk [vmem:[#allocation4 + $0x48] sm:$0xff] %vm21_vm1, %v1794_v16 }
  0x6e   :  { %624 = vmatprep.mubr.f32.mxu0 %v119_v41  ;;  %46 = vst.msk [vmem:[#allocation4 + $0x50] sm:$0xff] %vm21_vm1, %v1794_v16  ;;  %47 = vst.msk [vmem:[#allocation4 + $0x58] sm:$0xff] %vm21_vm1, %v1794_v16 }
  0x6f   :  { %48 = vst.msk [vmem:[#allocation4 + $0x60] sm:$0xff] %vm21_vm1, %v1794_v16  ;;  %49 = vst.msk [vmem:[#allocation4 + $0x68] sm:$0xff] %vm21_vm1, %v1794_v16 }
  0x70   :  { %476 = vmatmul.mubr.f32.gmra.mrb[22].mxu1 %v116_v42 }
  0x71   :  { %625 = vmatmul.mubr.f32.gmra.mrb[22].mxu0 %v118_v43  ;;  %481 = vmatprep.mubr.f32.mxu1 %v123_v44 }
  0x72   :  { %630 = vmatprep.mubr.f32.mxu0 %v125_v45 }
  0x74   :  { %482 = vmatmul.mubr.f32.gmra.mrb[24].mxu1 %v122_v46 }
  0x75   :  { %631 = vmatmul.mubr.f32.gmra.mrb[24].mxu0 %v124_v47  ;;  %487 = vmatprep.mubr.f32.mxu1 %v129_v48 }
  0x76   :  { %636 = vmatprep.mubr.f32.mxu0 %v131_v49 }
  0x78   :  { %488 = vmatmul.mubr.f32.gmra.mrb[26].mxu1 %v128_v50 }
  0x79   :  { %637 = vmatmul.mubr.f32.gmra.mrb[26].mxu0 %v130_v51  ;;  %1511 = vmatprep.mubr.msk.f32.mxu1 %vm302_vm0, %v97_v52 }
  0x7a   :  { %1504 = vmatprep.mubr.msk.f32.mxu0 %vm302_vm0, %v55_v53 }
  0x7c   :  { %750 = vmatmul.mubr.f32.vlgmr.msra.gmra.mrb[28].mxu1 %v96_v54 }
  0x7d   :  { %708 = vmatmul.mubr.f32.vlgmr.msra.gmra.mrb[0].mxu0 %v54_v55  ;;  %1512 = vmatprep.mubr.msk.f32.mxu1 %vm302_vm0, %v103_v56 }
  0x7e   :  { %1505 = vmatprep.mubr.msk.f32.mxu0 %vm302_vm0, %v61_v57 }
  0x80   :  { %756 = vmatmul.mubr.f32.gmra.mrb[30].mxu1 %v102_v58 }
  0x81   :  { %714 = vmatmul.mubr.f32.gmra.mrb[2].mxu0 %v60_v59  ;;  %1513 = vmatprep.mubr.msk.f32.mxu1 %vm302_vm0, %v109_v60 }
  0x82   :  { %1506 = vmatprep.mubr.msk.f32.mxu0 %vm302_vm0, %v67_v61 }
  0x84   :  { %762 = vmatmul.mubr.f32.gmra.mrb[32].mxu1 %v108_v62 }
  0x85   :  { %720 = vmatmul.mubr.f32.gmra.mrb[4].mxu0 %v66_v63  ;;  %1514 = vmatprep.mubr.msk.f32.mxu1 %vm302_vm0, %v115_v0 }
  0x86   :  { %1507 = vmatprep.mubr.msk.f32.mxu0 %vm302_vm0, %v73_v1 }
  0x88   :  { %768 = vmatmul.mubr.f32.gmra.mrb[34].mxu1 %v114_v2 }
  0x89   :  { %726 = vmatmul.mubr.f32.gmra.mrb[6].mxu0 %v72_v3  ;;  %1515 = vmatprep.mubr.msk.f32.mxu1 %vm302_vm0, %v121_v4 }
  0x8a   :  { %1508 = vmatprep.mubr.msk.f32.mxu0 %vm302_vm0, %v79_v5 }
  0x8c   :  { %774 = vmatmul.mubr.f32.gmra.mrb[36].mxu1 %v120_v6 }
  0x8d   :  { %732 = vmatmul.mubr.f32.gmra.mrb[8].mxu0 %v78_v7  ;;  %1516 = vmatprep.mubr.msk.f32.mxu1 %vm302_vm0, %v127_v8 }
  0x8e   :  { %1509 = vmatprep.mubr.msk.f32.mxu0 %vm302_vm0, %v85_v9 }
  0x90   :  { %780 = vmatmul.mubr.f32.gmra.mrb[38].mxu1 %v126_v10 }
  0x91   :  { %738 = vmatmul.mubr.f32.gmra.mrb[10].mxu0 %v84_v11  ;;  %1517 = vmatprep.mubr.msk.f32.mxu1 %vm302_vm0, %v133_v12 }
  0x92   :  { %1510 = vmatprep.mubr.msk.f32.mxu0 %vm302_vm0, %v91_v13 }
  0x94   :  { %786 = vmatmul.mubr.f32.gmra.mrb[40].mxu1 %v132_v14 }
  0x95   :  { %744 = vmatmul.mubr.f32.gmra.mrb[12].mxu0 %v90_v15 }
 0x117   :  { %v411_v17 = vpop.f32.mrb[0].mxu1 }
 0x118   :  { %v2619_v18 = vpop.f32.mrb[1].mxu1 }
 0x11b   :  { %v2621_v19 = vpop.f32.mrb[2].mxu1 }
 0x11c   :  { %v2623_v20 = vpop.f32.mrb[3].mxu1 }
 0x11f   :  { %v2625_v21 = vpop.f32.mrb[4].mxu1 }
 0x120   :  { %v2627_v22 = vpop.f32.mrb[5].mxu1 }
 0x123   :  { %v2629_v23 = vpop.f32.mrb[6].mxu1 }
 0x124   :  { %v2631_v24 = vpop.f32.mrb[7].mxu1 }
 0x127   :  { %v2633_v25 = vpop.f32.mrb[8].mxu1 }
 0x128   :  { %v2635_v26 = vpop.f32.mrb[9].mxu1 }
 0x12b   :  { %v2637_v27 = vpop.f32.mrb[10].mxu1 }
 0x12c   :  { %v2639_v28 = vpop.f32.mrb[11].mxu1 }
 0x12f   :  { %v2641_v29 = vpop.f32.mrb[12].mxu1 }
 0x130   :  { %v2643_v30 = vpop.f32.mrb[13].mxu1 }
 0x133   :  { %v453_v31 = vpop.f32.mrb[14].mxu1 }
 0x134   :  { %v602_v32 = vpop.f32.mrb[14].mxu0  ;;  %v455_v33 = vpop.f32.mrb[15].mxu1 }
 0x135   :  { %v603_v34 = vadd.f32 %v602_v32, %v453_v31  ;;  %v604_v35 = vpop.f32.mrb[15].mxu0 }
 0x136   :  { %v605_v36 = vadd.f32 %v604_v35, %v455_v33 }
 0x137   :  { %v459_v37 = vpop.f32.mrb[16].mxu1 }
 0x138   :  { %v608_v38 = vpop.f32.mrb[16].mxu0  ;;  %v461_v39 = vpop.f32.mrb[17].mxu1 }
 0x139   :  { %v609_v40 = vadd.f32 %v608_v38, %v459_v37  ;;  %v610_v41 = vpop.f32.mrb[17].mxu0 }
 0x13a   :  { %v611_v42 = vadd.f32 %v610_v41, %v461_v39 }
 0x13b   :  { %v465_v43 = vpop.f32.mrb[18].mxu1 }
 0x13c   :  { %v614_v44 = vpop.f32.mrb[18].mxu0  ;;  %v467_v45 = vpop.f32.mrb[19].mxu1 }
 0x13d   :  { %v2645_v46 = vadd.f32 %v614_v44, %v465_v43  ;;  %v616_v47 = vpop.f32.mrb[19].mxu0 }
 0x13e   :  { %v2647_v48 = vadd.f32 %v616_v47, %v467_v45 }
 0x13f   :  { %v471_v49 = vpop.f32.mrb[20].mxu1 }
 0x140   :  { %v620_v50 = vpop.f32.mrb[20].mxu0  ;;  %v473_v51 = vpop.f32.mrb[21].mxu1 }
 0x141   :  { %v2649_v52 = vadd.f32 %v620_v50, %v471_v49  ;;  %v622_v53 = vpop.f32.mrb[21].mxu0 }
 0x142   :  { %v2651_v54 = vadd.f32 %v622_v53, %v473_v51 }
 0x143   :  { %v477_v55 = vpop.f32.mrb[22].mxu1 }
 0x144   :  { %v626_v56 = vpop.f32.mrb[22].mxu0  ;;  %v479_v57 = vpop.f32.mrb[23].mxu1 }
 0x145   :  { %v2653_v58 = vadd.f32 %v626_v56, %v477_v55  ;;  %v628_v59 = vpop.f32.mrb[23].mxu0 }
 0x146   :  { %v2655_v60 = vadd.f32 %v628_v59, %v479_v57 }
 0x147   :  { %v483_v61 = vpop.f32.mrb[24].mxu1 }
 0x148   :  { %v632_v62 = vpop.f32.mrb[24].mxu0  ;;  %v485_v63 = vpop.f32.mrb[25].mxu1 }
 0x149   :  { %v2657_v0 = vadd.f32 %v632_v62, %v483_v61  ;;  %v634_v1 = vpop.f32.mrb[25].mxu0 }
 0x14a   :  { %v2659_v2 = vadd.f32 %v634_v1, %v485_v63 }
 0x14b   :  { %v489_v3 = vpop.f32.mrb[26].mxu1 }
 0x14c   :  { %v638_v4 = vpop.f32.mrb[26].mxu0  ;;  %v491_v5 = vpop.f32.mrb[27].mxu1 }
 0x14d   :  { %v2661_v6 = vadd.f32 %v638_v4, %v489_v3  ;;  %v640_v7 = vpop.f32.mrb[27].mxu0 }
 0x14e   :  { %v2663_v8 = vadd.f32 %v640_v7, %v491_v5 }
 0x14f   :  { %v751_v9 = vpop.f32.mrb[28].mxu1 }
 0x150   :  { %v709_v10 = vpop.f32.mrb[0].mxu0  ;;  %v752_v11 = vadd.f32 %v751_v9, %v603_v34  ;;  %v753_v12 = vpop.f32.mrb[29].mxu1 }
 0x151   :  { %v1706_v13 = vadd.f32 %v709_v10, %v411_v17  ;;  %v711_v14 = vpop.f32.mrb[1].mxu0  ;;  %v754_v15 = vadd.f32 %v753_v12, %v605_v36 }
 0x152   :  { %810 = vst [vmem:[#allocation2 + $0x70] sm:$0xff] %v752_v11  ;;  %v1707_v16 = vadd.f32 %v711_v14, %v2619_v18  ;;  %v951_v35 = vmul.f32 %v752_v11, %v752_v11 }
 0x153   :  { %795 = vst [vmem:[#allocation2] sm:$0xff] %v1706_v13  ;;  %811 = vst.msk [vmem:[#allocation2 + $0x78] sm:$0xff] %vm796_vm2, %v754_v15  ;;  %v757_v31 = vpop.f32.mrb[30].mxu1  ;;  %v866_v32 = vsel %vm796_vm2, %v754_v15, 0.0  ;;  %v937_v33 = vmul.f32 %v1706_v13, %v1706_v13  ;;  %v952_v37 = vmul.f32 %v754_v15, %v754_v15 }
 0x154   :  { %797 = vst.msk [vmem:[#allocation2 + $0x8] sm:$0xff] %vm796_vm2, %v1707_v16  ;;  %v715_v34 = vpop.f32.mrb[2].mxu0  ;;  %v758_v38 = vadd.f32 %v757_v31, %v609_v40  ;;  %v759_v39 = vpop.f32.mrb[31].mxu1  ;;  %v838_v17 = vsel %vm796_vm2, %v1707_v16, 0.0  ;;  %v867_v36 = vadd.f32 %v866_v32, %v752_v11  ;;  %v938_v41 = vmul.f32 %v1707_v16, %v1707_v16 }
 0x155   :  { %v1708_v18 = vadd.f32 %v715_v34, %v2621_v19  ;;  %v717_v43 = vpop.f32.mrb[3].mxu0  ;;  %v760_v44 = vadd.f32 %v759_v39, %v611_v42  ;;  %v839_v45 = vadd.f32 %v1706_v13, %v838_v17  ;;  %v993_v47 = vsel %vm796_vm2, %v952_v37, 0.0 }
 0x156   :  { %812 = vst [vmem:[#allocation2 + $0x80] sm:$0xff] %v758_v38  ;;  %v1709_v49 = vadd.f32 %v717_v43, %v2623_v20  ;;  %868 = vadd.xlane.f32.xlu1 %v867_v36  ;;  %v965_v50 = vsel %vm796_vm2, %v938_v41, 0.0  ;;  %v994_v51 = vadd.f32 %v993_v47, %v951_v35  ;;  %v953_v40 = vmul.f32 %v758_v38, %v758_v38 }
 0x157   :  { %798 = vst [vmem:[#allocation2 + $0x10] sm:$0xff] %v1708_v18  ;;  %813 = vst.msk [vmem:[#allocation2 + $0x88] sm:$0xff] %vm796_vm2, %v760_v44  ;;  %840 = vadd.xlane.f32.xlu0 %v839_v45  ;;  %v763_v53 = vpop.f32.mrb[32].mxu1  ;;  %v966_v55 = vadd.f32 %v965_v50, %v937_v33  ;;  %v939_v19 = vmul.f32 %v1708_v18, %v1708_v18  ;;  %v870_v42 = vsel %vm796_vm2, %v760_v44, 0.0 }
 0x158   :  { %v954_v56 = vmul.f32 %v760_v44, %v760_v44  ;;  %799 = vst.msk [vmem:[#allocation2 + $0x18] sm:$0xff] %vm796_vm2, %v1709_v49  ;;  %v721_v57 = vpop.f32.mrb[4].mxu0  ;;  %v764_v20 = vadd.f32 %v763_v53, %v2645_v46  ;;  %v765_v59 = vpop.f32.mrb[33].mxu1  ;;  %v842_v61 = vsel %vm796_vm2, %v1709_v49, 0.0  ;;  %v940_v62 = vmul.f32 %v1709_v49, %v1709_v49 }
 0x159   :  { %v2679_v63 = vadd.f32 %v870_v42, %v758_v38  ;;  %v1710_v1 = vadd.f32 %v721_v57, %v2625_v21  ;;  %v723_v3 = vpop.f32.mrb[5].mxu0  ;;  %v766_v4 = vadd.f32 %v765_v59, %v2647_v48  ;;  %v843_v5 = vadd.f32 %v1708_v18, %v842_v61 }
 0x15a   :  { %v997_v7 = vsel %vm796_vm2, %v954_v56, 0.0  ;;  %814 = vst [vmem:[#allocation2 + $0x90] sm:$0xff] %v764_v20  ;;  %v1711_v9 = vadd.f32 %v723_v3, %v2627_v22  ;;  %995 = vadd.xlane.f32.xlu1 %v994_v51  ;;  %v969_v46 = vsel %vm796_vm2, %v940_v62, 0.0  ;;  %v955_v11 = vmul.f32 %v764_v20, %v764_v20 }
 0x15b   :  { %v2686_v10 = vadd.f32 %v997_v7, %v953_v40  ;;  %800 = vst [vmem:[#allocation2 + $0x20] sm:$0xff] %v1710_v1  ;;  %815 = vst.msk [vmem:[#allocation2 + $0x98] sm:$0xff] %vm796_vm2, %v766_v4  ;;  %967 = vadd.xlane.f32.xlu0 %v966_v55  ;;  %v769_v21 = vpop.f32.mrb[34].mxu1  ;;  %v970_v12 = vadd.f32 %v969_v46, %v939_v19  ;;  %v874_v48 = vsel %vm796_vm2, %v766_v4, 0.0 }
 0x15c   :  { %v941_v13 = vmul.f32 %v1710_v1, %v1710_v1  ;;  %v956_v14 = vmul.f32 %v766_v4, %v766_v4  ;;  %801 = vst.msk [vmem:[#allocation2 + $0x28] sm:$0xff] %vm796_vm2, %v1711_v9  ;;  %v727_v15 = vpop.f32.mrb[6].mxu0  ;;  %v770_v22 = vadd.f32 %v769_v21, %v2649_v52  ;;  %v771_v16 = vpop.f32.mrb[35].mxu1  ;;  %v846_v31 = vsel %vm796_vm2, %v1711_v9, 0.0 }
 0x15d   :  { %v875_v32 = vadd.f32 %v874_v48, %v764_v20  ;;  %v942_v33 = vmul.f32 %v1711_v9, %v1711_v9  ;;  %v1712_v35 = vadd.f32 %v727_v15, %v2629_v23  ;;  %v729_v37 = vpop.f32.mrb[7].mxu0  ;;  %v772_v34 = vadd.f32 %v771_v16, %v2651_v54 }
 0x15e   :  { %v847_v38 = vadd.f32 %v1710_v1, %v846_v31  ;;  %v1001_v39 = vsel %vm796_vm2, %v956_v14, 0.0  ;;  %816 = vst [vmem:[#allocation2 + $0xa0] sm:$0xff] %v770_v22  ;;  %v1713_v17 = vadd.f32 %v729_v37, %v2631_v24  ;;  %971 = vadd.xlane.f32.xlu1 %v970_v12  ;;  %v957_v41 = vmul.f32 %v770_v22, %v770_v22 }
 0x15f   :  { %v973_v36 = vsel %vm796_vm2, %v942_v33, 0.0  ;;  %v2698_v52 = vadd.f32 %v1001_v39, %v955_v11  ;;  %802 = vst [vmem:[#allocation2 + $0x30] sm:$0xff] %v1712_v35  ;;  %817 = vst.msk [vmem:[#allocation2 + $0xa8] sm:$0xff] %vm796_vm2, %v772_v34  ;;  %844 = vadd.xlane.f32.xlu0 %v843_v5  ;;  %v775_v23 = vpop.f32.mrb[36].mxu1  ;;  %v878_v54 = vsel %vm796_vm2, %v772_v34, 0.0  ;;  %v958_v43 = vmul.f32 %v772_v34, %v772_v34 }
 0x160   :  { %v2701_v18 = vadd.f32 %v973_v36, %v941_v13  ;;  %v943_v44 = vmul.f32 %v1712_v35, %v1712_v35  ;;  %803 = vst.msk [vmem:[#allocation2 + $0x38] sm:$0xff] %vm796_vm2, %v1713_v17  ;;  %v733_v24 = vpop.f32.mrb[8].mxu0  ;;  %v776_v45 = vadd.f32 %v775_v23, %v2653_v58  ;;  %v777_v47 = vpop.f32.mrb[37].mxu1  ;;  %v2706_v49 = vadd.f32 %v878_v54, %v770_v22 }
 0x161   :  { %v850_v50 = vsel %vm796_vm2, %v1713_v17, 0.0  ;;  %v944_v51 = vmul.f32 %v1713_v17, %v1713_v17  ;;  %v1714_v40 = vadd.f32 %v733_v24, %v2633_v25  ;;  %v735_v53 = vpop.f32.mrb[9].mxu0  ;;  %v778_v55 = vadd.f32 %v777_v47, %v2655_v60 }
 0x162   :  { %v2711_v19 = vadd.f32 %v1712_v35, %v850_v50  ;;  %v1005_v42 = vsel %vm796_vm2, %v958_v43, 0.0  ;;  %818 = vst [vmem:[#allocation2 + $0xb0] sm:$0xff] %v776_v45  ;;  %v1715_v56 = vadd.f32 %v735_v53, %v2635_v26  ;;  %848 = vadd.xlane.f32.xlu1 %v847_v38  ;;  %v959_v20 = vmul.f32 %v776_v45, %v776_v45 }
 0x163   :  { %v2715_v58 = vadd.f32 %v1005_v42, %v957_v41  ;;  %v977_v57 = vsel %vm796_vm2, %v944_v51, 0.0  ;;  %804 = vst [vmem:[#allocation2 + $0x40] sm:$0xff] %v1714_v40  ;;  %819 = vst.msk [vmem:[#allocation2 + $0xb8] sm:$0xff] %vm796_vm2, %v778_v55  ;;  %872 = vadd.xlane.f32.xlu0 %v2679_v63  ;;  %v781_v25 = vpop.f32.mrb[38].mxu1  ;;  %v882_v59 = vsel %vm796_vm2, %v778_v55, 0.0  ;;  %v945_v61 = vmul.f32 %v1714_v40, %v1714_v40  ;;  %v824_v51 = vld [vmem:[#allocation3] sm:$0xff] }
 0x164   :  { %v2720_v60 = vadd.f32 %v977_v57, %v943_v44  ;;  %v960_v62 = vmul.f32 %v778_v55, %v778_v55  ;;  %805 = vst.msk [vmem:[#allocation2 + $0x48] sm:$0xff] %vm796_vm2, %v1715_v56  ;;  %v739_v26 = vpop.f32.mrb[10].mxu0  ;;  %v782_v1 = vadd.f32 %v781_v25, %v2657_v0  ;;  %v783_v3 = vpop.f32.mrb[39].mxu1  ;;  %v854_v4 = vsel %vm796_vm2, %v1715_v56, 0.0  ;;  %v930_v42 = vld [vmem:[#allocation4 + $0x38] sm:$0xff] }
 0x165   :  { %v883_v5 = vadd.f32 %v882_v59, %v776_v45  ;;  %v946_v7 = vmul.f32 %v1715_v56, %v1715_v56  ;;  %v1716_v9 = vadd.f32 %v739_v26, %v2637_v27  ;;  %v741_v63 = vpop.f32.mrb[11].mxu0  ;;  %v784_v46 = vadd.f32 %v783_v3, %v2659_v2  ;;  %v923_v56 = vld [vmem:[#allocation4] sm:$0xff]  ;;  %v825_v59 = vld [vmem:[#allocation3 + $0x8] sm:$0xff] }
 0x166   :  { %v855_v11 = vadd.f32 %v1714_v40, %v854_v4  ;;  %v1009_v21 = vsel %vm796_vm2, %v960_v62, 0.0  ;;  %820 = vst [vmem:[#allocation2 + $0xc0] sm:$0xff] %v782_v1  ;;  %v1717_v12 = vadd.f32 %v741_v63, %v2639_v28  ;;  %876 = vadd.xlane.f32.xlu1 %v875_v32  ;;  %v961_v13 = vmul.f32 %v782_v1, %v782_v1  ;;  %v826_v3 = vld [vmem:[#allocation3 + $0x10] sm:$0xff] }
 0x167   :  { %v981_v48 = vsel %vm796_vm2, %v946_v7, 0.0  ;;  %v1010_v0 = vadd.f32 %v1009_v21, %v959_v20  ;;  %806 = vst [vmem:[#allocation2 + $0x50] sm:$0xff] %v1716_v9  ;;  %821 = vst.msk [vmem:[#allocation2 + $0xc8] sm:$0xff] %vm796_vm2, %v784_v46  ;;  %999 = vadd.xlane.f32.xlu0 %v2686_v10  ;;  %v787_v27 = vpop.f32.mrb[40].mxu1  ;;  %v886_v2 = vsel %vm796_vm2, %v784_v46, 0.0  ;;  %v947_v15 = vmul.f32 %v1716_v9, %v1716_v9 }
 0x168   :  { %v982_v14 = vadd.f32 %v981_v48, %v945_v61  ;;  %v962_v22 = vmul.f32 %v784_v46, %v784_v46  ;;  %807 = vst.msk [vmem:[#allocation2 + $0x58] sm:$0xff] %vm796_vm2, %v1717_v12  ;;  %v745_v16 = vpop.f32.mrb[12].mxu0  ;;  %v788_v28 = vadd.f32 %v787_v27, %v2661_v6  ;;  %v789_v31 = vpop.f32.mrb[41].mxu1  ;;  %v887_v32 = vadd.f32 %v886_v2, %v782_v1  ;;  %v833_v48 = vld [vmem:[#allocation3 + $0x48] sm:$0xff] }
 0x169   :  { %v858_v33 = vsel %vm796_vm2, %v1717_v12, 0.0  ;;  %v948_v35 = vmul.f32 %v1717_v12, %v1717_v12  ;;  %v1718_v37 = vadd.f32 %v745_v16, %v2641_v29  ;;  %v747_v34 = vpop.f32.mrb[13].mxu0  ;;  %v790_v10 = vadd.f32 %v789_v31, %v2663_v8 }
 0x16a   :  { %v859_v38 = vadd.f32 %v1716_v9, %v858_v33  ;;  %v1013_v39 = vsel %vm796_vm2, %v962_v22, 0.0  ;;  %822 = vst [vmem:[#allocation2 + $0xd0] sm:$0xff] %v788_v28  ;;  %v1719_v17 = vadd.f32 %v747_v34, %v2643_v30  ;;  %1003 = vadd.xlane.f32.xlu1 %v2698_v52  ;;  %v963_v43 = vmul.f32 %v788_v28, %v788_v28  ;;  %v925_v34 = vld [vmem:[#allocation4 + $0x10] sm:$0xff] }
 0x16b   :  { %v985_v6 = vsel %vm796_vm2, %v948_v35, 0.0  ;;  %v1014_v36 = vadd.f32 %v1013_v39, %v961_v13  ;;  %808 = vst [vmem:[#allocation2 + $0x60] sm:$0xff] %v1718_v37  ;;  %823 = vst.msk [vmem:[#allocation2 + $0xd8] sm:$0xff] %vm796_vm2, %v790_v10  ;;  %975 = vadd.xlane.f32.xlu0 %v2701_v18  ;;  %v890_v41 = vsel %vm796_vm2, %v790_v10, 0.0  ;;  %v964_v8 = vmul.f32 %v790_v10, %v790_v10  ;;  %v931_v13 = vld [vmem:[#allocation4 + $0x40] sm:$0xff]  ;;  %v932_v35 = vld [vmem:[#allocation4 + $0x48] sm:$0xff] }
 0x16c   :  { %v986_v29 = vadd.f32 %v985_v6, %v947_v15  ;;  %809 = vst.msk [vmem:[#allocation2 + $0x68] sm:$0xff] %vm796_vm2, %v1719_v17  ;;  %v862_v23 = vsel %vm796_vm2, %v1719_v17, 0.0  ;;  %v950_v54 = vmul.f32 %v1719_v17, %v1719_v17  ;;  %v891_v30 = vadd.f32 %v890_v41, %v788_v28 }
 0x16d   :  { %v863_v52 = vadd.f32 %v1718_v37, %v862_v23  ;;  %v949_v44 = vmul.f32 %v1718_v37, %v1718_v37  ;;  %v1017_v24 = vsel %vm796_vm2, %v964_v8, 0.0  ;;  %v1795_v50 = vmov 0  }
 0x16e   :  { %852 = vadd.xlane.f32.xlu1 %v2711_v19  ;;  %v989_v45 = vsel %vm796_vm2, %v950_v54, 0.0  ;;  %v1018_v18 = vadd.f32 %v1017_v24, %v963_v43  ;;  %1764 = vset.pattern.permute.xlu0 %v1795_v50  ;;  %v827_v54 = vld [vmem:[#allocation3 + $0x18] sm:$0xff] }
 0x16f   :  { %880 = vadd.xlane.f32.xlu0 %v2706_v49  ;;  %v990_v47 = vadd.f32 %v989_v45, %v949_v44  ;;  %1765 = vset.pattern.permute.xlu1 %v1795_v50  ;;  %v831_v49 = vld [vmem:[#allocation3 + $0x38] sm:$0xff]  ;;  %v834_v44 = vld [vmem:[#allocation3 + $0x50] sm:$0xff] }
 0x172   :  { %979 = vadd.xlane.f32.xlu1 %v2720_v60  ;;  %v924_v60 = vld [vmem:[#allocation4 + $0x8] sm:$0xff] }
 0x173   :  { %1007 = vadd.xlane.f32.xlu0 %v2715_v58 }
 0x176   :  { %884 = vadd.xlane.f32.xlu1 %v883_v5  ;;  %v832_v5 = vld [vmem:[#allocation3 + $0x40] sm:$0xff] }
 0x177   :  { %856 = vadd.xlane.f32.xlu0 %v855_v11 }
 0x17a   :  { %1011 = vadd.xlane.f32.xlu1 %v1010_v0 }
 0x17b   :  { %983 = vadd.xlane.f32.xlu0 %v982_v14 }
 0x17e   :  { %860 = vadd.xlane.f32.xlu1 %v859_v38 }
 0x17f   :  { %888 = vadd.xlane.f32.xlu0 %v887_v32 }
 0x182   :  { %987 = vadd.xlane.f32.xlu1 %v986_v29 }
 0x183   :  { %864 = vadd.xlane.f32.xlu0 %v863_v52 }
 0x186   :  { %892 = vadd.xlane.f32.xlu1 %v891_v30 }
 0x187   :  { %991 = vadd.xlane.f32.xlu0 %v990_v47 }
 0x18a   :  { %1019 = vadd.xlane.f32.xlu1 %v1018_v18 }
 0x18b   :  { %1015 = vadd.xlane.f32.xlu0 %v1014_v36 }
 0x1e3   :  { %v869_v40 = vpop.xlane.xlu1 %868 }
 0x1e4   :  { %v841_v53 = vpop.xlane.xlu0 %840  ;;  %v901_v55 = vadd.f32 %v869_v40, %v831_v49 }
 0x1e5   :  { %v894_v19 = vadd.f32 %v841_v53, %v824_v51  ;;  %v926_v53 = vld [vmem:[#allocation4 + $0x18] sm:$0xff] }
 0x1e6   :  { %916 = vst.msk [vmem:[#allocation3 + $0x38] sm:$0xff] %vm21_vm1, %v901_v55 }
 0x1e7   :  { %909 = vst.msk [vmem:[#allocation3] sm:$0xff] %vm21_vm1, %v894_v19  ;;  %v996_v58 = vpop.xlane.xlu1 %995 }
 0x1e8   :  { %v968_v57 = vpop.xlane.xlu0 %967  ;;  %v1028_v20 = vadd.f32 %v996_v58, %v930_v42  ;;  %v933_v42 = vld [vmem:[#allocation4 + $0x50] sm:$0xff] }
 0x1e9   :  { %v1021_v25 = vadd.f32 %v968_v57, %v923_v56 }
 0x1ea   :  { %1042 = vst.msk [vmem:[#allocation4 + $0x38] sm:$0xff] %vm21_vm1, %v1028_v20 }
 0x1eb   :  { %1035 = vst.msk [vmem:[#allocation4] sm:$0xff] %vm21_vm1, %v1021_v25  ;;  %v972_v61 = vpop.xlane.xlu1 %971 }
 0x1ec   :  { %v845_v62 = vpop.xlane.xlu0 %844  ;;  %v1022_v26 = vadd.f32 %v972_v61, %v924_v60 }
 0x1ed   :  { %v895_v1 = vadd.f32 %v845_v62, %v825_v59  ;;  %v1059_v4 = vld [vmem:[#allocation3 + $0x38] sm:$0xff] }
 0x1ee   :  { %1036 = vst.msk [vmem:[#allocation4 + $0x8] sm:$0xff] %vm21_vm1, %v1022_v26  ;;  %v1052_v7 = vld [vmem:[#allocation3] sm:$0xff]  ;;  %v2759_v9 = vmul.f32 0.0051020407, %v1059_v4 }
 0x1ef   :  { %910 = vst.msk [vmem:[#allocation3 + $0x8] sm:$0xff] %vm21_vm1, %v895_v1  ;;  %v849_v63 = vpop.xlane.xlu1 %848  ;;  %v2762_v46 = vmul.f32 0.0051020407, %v1052_v7  ;;  %v835_v1 = vld [vmem:[#allocation3 + $0x58] sm:$0xff] }
 0x1f0   :  { %v873_v11 = vpop.xlane.xlu0 %872  ;;  %v896_v21 = vadd.f32 %v849_v63, %v826_v3  ;;  %v1115_v2 = vmul.f32 %v2759_v9, %v2759_v9  ;;  %v1185_v7 = vld [vmem:[%s3040_s2 + $0x38] sm:$0xff] }
 0x1f1   :  { %v902_v12 = vadd.f32 %v873_v11, %v832_v5  ;;  %v1087_v0 = vld [vmem:[#allocation4 + $0x38] sm:$0xff]  ;;  %v1108_v16 = vmul.f32 %v2762_v46, %v2762_v46  ;;  %v828_v5 = vld [vmem:[#allocation3 + $0x20] sm:$0xff] }
 0x1f2   :  { %911 = vst.msk [vmem:[#allocation3 + $0x10] sm:$0xff] %vm21_vm1, %v896_v21  ;;  %v1080_v27 = vld [vmem:[#allocation4] sm:$0xff]  ;;  %v1101_v14 = vmul.f32 0.0051020407, %v1087_v0 }
 0x1f3   :  { %917 = vst.msk [vmem:[#allocation3 + $0x40] sm:$0xff] %vm21_vm1, %v902_v12  ;;  %v877_v15 = vpop.xlane.xlu1 %876  ;;  %v1094_v22 = vmul.f32 0.0051020407, %v1080_v27 }
 0x1f4   :  { %v1000_v28 = vpop.xlane.xlu0 %999  ;;  %v903_v31 = vadd.f32 %v877_v15, %v833_v48  ;;  %v1129_v32 = vsub.f32 %v1101_v14, %v1115_v2  ;;  %v1178_v48 = vld [vmem:[%s3040_s2] sm:$0xff] }
 0x1f5   :  { %v1029_v33 = vadd.f32 %v1000_v28, %v931_v13  ;;  %v1122_v37 = vsub.f32 %v1094_v22, %v1108_v16  ;;  %v1081_v39 = vld [vmem:[#allocation4 + $0x8] sm:$0xff] }
 0x1f6   :  { %918 = vst.msk [vmem:[#allocation3 + $0x48] sm:$0xff] %vm21_vm1, %v903_v31  ;;  %v1143_v10 = vmax.f32 %v1129_v32, 0.0  ;;  %v1053_v38 = vld [vmem:[#allocation3 + $0x8] sm:$0xff]  ;;  %v1095_v43 = vmul.f32 0.0051020407, %v1081_v39 }
 0x1f7   :  { %1043 = vst.msk [vmem:[#allocation4 + $0x40] sm:$0xff] %vm21_vm1, %v1029_v33  ;;  %v1004_v17 = vpop.xlane.xlu1 %1003  ;;  %v1136_v6 = vmax.f32 %v1122_v37, 0.0  ;;  %v2772_v36 = vmul.f32 0.0051020407, %v1053_v38  ;;  %v934_v31 = vld [vmem:[#allocation4 + $0x58] sm:$0xff]  ;;  %v1213_v38 = vld [vmem:[%s3041_s3 + $0x38] sm:$0xff] }
 0x1f8   :  { %v976_v29 = vpop.xlane.xlu0 %975  ;;  %v1030_v41 = vadd.f32 %v1004_v17, %v932_v35  ;;  %v1157_v8 = vadd.f32 1e-05, %v1143_v10  ;;  %v927_v10 = vld [vmem:[#allocation4 + $0x20] sm:$0xff] }
 0x1f9   :  { %v1023_v23 = vadd.f32 %v976_v29, %v925_v34  ;;  %v1150_v30 = vadd.f32 1e-05, %v1136_v6  ;;  %v1109_v52 = vmul.f32 %v2772_v36, %v2772_v36  ;;  %v1054_v51 = vld [vmem:[#allocation3 + $0x10] sm:$0xff] }
 0x1fa   :  { %1044 = vst.msk [vmem:[#allocation4 + $0x48] sm:$0xff] %vm21_vm1, %v1030_v41  ;;  %1766 = vrsqrt.f32 %v1157_v8  ;;  %v1060_v24 = vld [vmem:[#allocation3 + $0x40] sm:$0xff]  ;;  %v2786_v59 = vmul.f32 0.0051020407, %v1054_v51 }
 0x1fb   :  { %1037 = vst.msk [vmem:[#allocation4 + $0x10] sm:$0xff] %vm21_vm1, %v1023_v23  ;;  %v853_v45 = vpop.xlane.xlu1 %852  ;;  %1768 = vrsqrt.f32 %v1150_v30  ;;  %v1123_v18 = vsub.f32 %v1095_v43, %v1109_v52  ;;  %v2778_v47 = vmul.f32 0.0051020407, %v1060_v24  ;;  %v829_v24 = vld [vmem:[#allocation3 + $0x28] sm:$0xff] }
 0x1fc   :  { %v881_v50 = vpop.xlane.xlu0 %880  ;;  %v897_v49 = vadd.f32 %v853_v45, %v827_v54  ;;  %v1110_v27 = vmul.f32 %v2786_v59, %v2786_v59  ;;  %v1179_v45 = vld [vmem:[%s3040_s2 + $0x8] sm:$0xff] }
 0x1fd   :  { %v904_v40 = vadd.f32 %v881_v50, %v834_v44  ;;  %v1137_v55 = vmax.f32 %v1123_v18, 0.0  ;;  %v1061_v19 = vld [vmem:[#allocation3 + $0x48] sm:$0xff]  ;;  %v1116_v60 = vmul.f32 %v2778_v47, %v2778_v47 }
 0x1fe   :  { %912 = vst.msk [vmem:[#allocation3 + $0x18] sm:$0xff] %vm21_vm1, %v897_v49  ;;  %v1088_v56 = vld [vmem:[#allocation4 + $0x40] sm:$0xff]  ;;  %v2781_v58 = vmul.f32 0.0051020407, %v1061_v19 }
 0x1ff   :  { %919 = vst.msk [vmem:[#allocation3 + $0x50] sm:$0xff] %vm21_vm1, %v904_v40  ;;  %v980_v57 = vpop.xlane.xlu1 %979  ;;  %v1151_v20 = vadd.f32 1e-05, %v1137_v55  ;;  %v1102_v25 = vmul.f32 0.0051020407, %v1088_v56 }
 0x200   :  { %v1008_v61 = vpop.xlane.xlu0 %1007  ;;  %v1024_v62 = vadd.f32 %v980_v57, %v926_v53  ;;  %v1117_v11 = vmul.f32 %v2781_v58, %v2781_v58 }
 0x201   :  { %v1031_v26 = vadd.f32 %v1008_v61, %v933_v42  ;;  %1770 = vrsqrt.f32 %v1151_v20  ;;  %v1130_v3 = vsub.f32 %v1102_v25, %v1116_v60  ;;  %v1089_v4 = vld [vmem:[#allocation4 + $0x48] sm:$0xff] }
 0x202   :  { %1038 = vst.msk [vmem:[#allocation4 + $0x18] sm:$0xff] %vm21_vm1, %v1024_v62  ;;  %v1103_v63 = vmul.f32 0.0051020407, %v1089_v4  ;;  %v1082_v21 = vld [vmem:[#allocation4 + $0x10] sm:$0xff]  ;;  %v928_v61 = vld [vmem:[#allocation4 + $0x28] sm:$0xff] }
 0x203   :  { %1045 = vst.msk [vmem:[#allocation4 + $0x50] sm:$0xff] %vm21_vm1, %v1031_v26  ;;  %v885_v12 = vpop.xlane.xlu1 %884  ;;  %v1144_v0 = vmax.f32 %v1130_v3, 0.0  ;;  %v1096_v13 = vmul.f32 0.0051020407, %v1082_v21 }
 0x204   :  { %v1767_v14 = vpop.eup %1766  ;;  %v857_v2 = vpop.xlane.xlu0 %856  ;;  %v905_v15 = vadd.f32 %v885_v12, %v835_v1  ;;  %v1131_v22 = vsub.f32 %v1103_v63, %v1117_v11  ;;  %v830_v1 = vld [vmem:[#allocation3 + $0x30] sm:$0xff]  ;;  %v1186_v63 = vld [vmem:[%s3040_s2 + $0x40] sm:$0xff] }
 0x205   :  { %v1769_v16 = vpop.eup %1768  ;;  %v898_v28 = vadd.f32 %v857_v2, %v828_v5  ;;  %v1199_v32 = vmul.f32 %v1767_v14, %v1185_v7  ;;  %v1158_v33 = vadd.f32 1e-05, %v1144_v0  ;;  %v1124_v35 = vsub.f32 %v1096_v13, %v1110_v27  ;;  %v1055_v37 = vld [vmem:[#allocation3 + $0x18] sm:$0xff]  ;;  %v837_v14 = vld [vmem:[#allocation3 + $0x68] sm:$0xff] }
 0x206   :  { %920 = vst.msk [vmem:[#allocation3 + $0x58] sm:$0xff] %vm21_vm1, %v905_v15  ;;  %v2801_v34 = vmul.f32 %v1769_v16, %v1178_v48  ;;  %v1145_v39 = vmax.f32 %v1131_v22, 0.0  ;;  %v2806_v17 = vmul.f32 0.0051020407, %v1055_v37  ;;  %v1062_v6 = vld [vmem:[#allocation3 + $0x50] sm:$0xff]  ;;  %v929_v15 = vld [vmem:[#allocation4 + $0x30] sm:$0xff] }
 0x207   :  { %913 = vst.msk [vmem:[#allocation3 + $0x20] sm:$0xff] %vm21_vm1, %v898_v28  ;;  %v1012_v29 = vpop.xlane.xlu1 %1011  ;;  %1313 = vperm.xlu1 %1765, %v1199_v32   ;;  %v1227_v41 = vmul.f32 %v1199_v32, %v2759_v9  ;;  %1772 = vrsqrt.f32 %v1158_v33  ;;  %v1138_v8 = vmax.f32 %v1124_v35, 0.0  ;;  %v2810_v23 = vmul.f32 0.0051020407, %v1062_v6  ;;  %v836_v9 = vld [vmem:[#allocation3 + $0x60] sm:$0xff]  ;;  %v1187_v16 = vld [vmem:[%s3040_s2 + $0x48] sm:$0xff] }
 0x208   :  { %1278 = vperm.xlu0 %1764, %v2801_v34   ;;  %v984_v54 = vpop.xlane.xlu0 %983  ;;  %v1032_v30 = vadd.f32 %v1012_v29, %v934_v31  ;;  %v1159_v43 = vadd.f32 1e-05, %v1145_v39  ;;  %v1111_v51 = vmul.f32 %v2806_v17, %v2806_v17  ;;  %v1220_v28 = vmul.f32 %v2801_v34, %v2762_v46  ;;  %v1206_v37 = vld [vmem:[%s3041_s3] sm:$0xff] }
 0x209   :  { %v1025_v52 = vadd.f32 %v984_v54, %v927_v10  ;;  %v1241_v44 = vsub.f32 %v1213_v38, %v1227_v41  ;;  %v1152_v18 = vadd.f32 1e-05, %v1138_v8  ;;  %v1083_v50 = vld [vmem:[#allocation4 + $0x18] sm:$0xff]  ;;  %v1118_v42 = vmul.f32 %v2810_v23, %v2810_v23 }
 0x20a   :  { %1046 = vst.msk [vmem:[#allocation4 + $0x58] sm:$0xff] %vm21_vm1, %v1032_v30  ;;  %1774 = vrsqrt.f32 %v1159_v43  ;;  %v1097_v49 = vmul.f32 0.0051020407, %v1083_v50  ;;  %v1090_v40 = vld [vmem:[#allocation4 + $0x50] sm:$0xff]  ;;  %v936_v30 = vld [vmem:[#allocation4 + $0x68] sm:$0xff]  ;;  %v1207_v43 = vld [vmem:[%s3041_s3 + $0x8] sm:$0xff] }
 0x20b   :  { %v1771_v53 = vpop.eup %1770  ;;  %1039 = vst.msk [vmem:[#allocation4 + $0x20] sm:$0xff] %vm21_vm1, %v1025_v52  ;;  %v861_v55 = vpop.xlane.xlu1 %860  ;;  %v1104_v19 = vmul.f32 0.0051020407, %v1090_v40  ;;  %1776 = vrsqrt.f32 %v1152_v18 }
 0x20c   :  { %v889_v56 = vpop.xlane.xlu0 %888  ;;  %1411 = vperm.xlu0 %1764, %v1241_v44   ;;  %v899_v57 = vadd.f32 %v861_v55, %v829_v24  ;;  %v1193_v20 = vmul.f32 %v1771_v53, %v1179_v45  ;;  %v1125_v25 = vsub.f32 %v1097_v49, %v1111_v51  ;;  %v935_v44 = vld [vmem:[#allocation4 + $0x60] sm:$0xff]  ;;  %v1234_v24 = vsub.f32 %v1206_v37, %v1220_v28 }
 0x20d   :  { %v906_v60 = vadd.f32 %v889_v56, %v836_v9  ;;  %v1063_v62 = vld [vmem:[#allocation3 + $0x58] sm:$0xff]  ;;  %v1132_v26 = vsub.f32 %v1104_v19, %v1118_v42  ;;  %v1180_v49 = vld [vmem:[%s3040_s2 + $0x10] sm:$0xff] }
 0x20e   :  { %914 = vst.msk [vmem:[#allocation3 + $0x28] sm:$0xff] %vm21_vm1, %v899_v57  ;;  %1283 = vperm.xlu1 %1765, %v1193_v20   ;;  %v1139_v3 = vmax.f32 %v1125_v25, 0.0  ;;  %v2823_v4 = vmul.f32 0.0051020407, %v1063_v62  ;;  %v1056_v5 = vld [vmem:[#allocation3 + $0x20] sm:$0xff]  ;;  %v1221_v10 = vmul.f32 %v1193_v20, %v2772_v36  ;;  %v1188_v37 = vld [vmem:[%s3040_s2 + $0x50] sm:$0xff] }
 0x20f   :  { %921 = vst.msk [vmem:[#allocation3 + $0x60] sm:$0xff] %vm21_vm1, %v906_v60  ;;  %v988_v7 = vpop.xlane.xlu1 %987  ;;  %v2829_v11 = vmul.f32 0.0051020407, %v1056_v5  ;;  %v1146_v0 = vmax.f32 %v1132_v26, 0.0  ;;  %v1215_v60 = vld [vmem:[%s3041_s3 + $0x48] sm:$0xff] }
 0x210   :  { %v865_v21 = vpop.xlane.xlu0 %864  ;;  %v1026_v12 = vadd.f32 %v988_v7, %v928_v61  ;;  %v1153_v48 = vadd.f32 1e-05, %v1139_v3  ;;  %v1119_v32 = vmul.f32 %v2823_v4, %v2823_v4  ;;  %v1235_v53 = vsub.f32 %v1207_v43, %v1221_v10 }
 0x211   :  { %v1773_v13 = vpop.eup %1772  ;;  %v900_v27 = vadd.f32 %v865_v21, %v830_v1  ;;  %v1091_v2 = vld [vmem:[#allocation4 + $0x58] sm:$0xff]  ;;  %v1112_v39 = vmul.f32 %v2829_v11, %v2829_v11  ;;  %v1160_v41 = vadd.f32 1e-05, %v1146_v0 }
 0x212   :  { %1040 = vst.msk [vmem:[#allocation4 + $0x28] sm:$0xff] %vm21_vm1, %v1026_v12  ;;  %v1200_v22 = vmul.f32 %v1773_v13, %v1186_v63  ;;  %v1105_v31 = vmul.f32 0.0051020407, %v1091_v2  ;;  %v1084_v33 = vld [vmem:[#allocation4 + $0x20] sm:$0xff]  ;;  %1778 = vrsqrt.f32 %v1153_v48  ;;  %v1181_v12 = vld [vmem:[%s3040_s2 + $0x18] sm:$0xff] }
 0x213   :  { %915 = vst.msk [vmem:[#allocation3 + $0x30] sm:$0xff] %vm21_vm1, %v900_v27  ;;  %v893_v35 = vpop.xlane.xlu1 %892  ;;  %v1098_v38 = vmul.f32 0.0051020407, %v1084_v33  ;;  %1780 = vrsqrt.f32 %v1160_v41 }
 0x214   :  { %v1775_v6 = vpop.eup %1774  ;;  %v992_v46 = vpop.xlane.xlu0 %991  ;;  %1318 = vperm.xlu1 %1765, %v1200_v22   ;;  %v907_v34 = vadd.f32 %v893_v35, %v837_v14  ;;  %v1133_v29 = vsub.f32 %v1105_v31, %v1119_v32  ;;  %v1228_v56 = vmul.f32 %v1200_v22, %v2778_v47  ;;  %v1214_v47 = vld [vmem:[%s3041_s3 + $0x40] sm:$0xff]  ;;  %v1189_v31 = vld [vmem:[%s3040_s2 + $0x58] sm:$0xff] }
 0x215   :  { %v1027_v8 = vadd.f32 %v992_v46, %v929_v15  ;;  %v1201_v54 = vmul.f32 %v1775_v6, %v1187_v16  ;;  %v1126_v52 = vsub.f32 %v1098_v38, %v1112_v39  ;;  %v1057_v36 = vld [vmem:[#allocation3 + $0x28] sm:$0xff]  ;;  %v1777_v50 = vpop.eup %1776 }
 0x216   :  { %922 = vst.msk [vmem:[#allocation3 + $0x68] sm:$0xff] %vm21_vm1, %v907_v34  ;;  %v1147_v45 = vmax.f32 %v1133_v29, 0.0  ;;  %v2850_v18 = vmul.f32 0.0051020407, %v1057_v36  ;;  %v1194_v25 = vmul.f32 %v1777_v50, %v1180_v49  ;;  %v1064_v26 = vld [vmem:[#allocation3 + $0x60] sm:$0xff]  ;;  %v1242_v21 = vsub.f32 %v1214_v47, %v1228_v56  ;;  %v1208_v36 = vld [vmem:[%s3041_s3 + $0x10] sm:$0xff] }
 0x217   :  { %1041 = vst.msk [vmem:[#allocation4 + $0x30] sm:$0xff] %vm21_vm1, %v1027_v8  ;;  %1323 = vperm.xlu0 %1764, %v1201_v54   ;;  %v1020_v9 = vpop.xlane.xlu1 %1019  ;;  %v1229_v42 = vmul.f32 %v1201_v54, %v2781_v58  ;;  %v1140_v57 = vmax.f32 %v1126_v52, 0.0  ;;  %v2873_v27 = vmul.f32 0.0051020407, %v1064_v26  ;;  %v1183_v56 = vld [vmem:[%s3040_s2 + $0x28] sm:$0xff]  ;;  %v1190_v26 = vld [vmem:[%s3040_s2 + $0x60] sm:$0xff] }
 0x218   :  { %v1016_v51 = vpop.xlane.xlu0 %1015  ;;  %1376 = vperm.xlu1 %1765, %v1234_v24   ;;  %v1034_v40 = vadd.f32 %v1020_v9, %v936_v30  ;;  %v1161_v55 = vadd.f32 1e-05, %v1147_v45  ;;  %v1113_v62 = vmul.f32 %v2850_v18, %v2850_v18  ;;  %v1209_v30 = vld [vmem:[%s3041_s3 + $0x18] sm:$0xff]  ;;  %v1222_v43 = vmul.f32 %v1194_v25, %v2786_v59  ;;  %v1211_v47 = vld [vmem:[%s3041_s3 + $0x28] sm:$0xff] }
 0x219   :  { %v1033_v19 = vadd.f32 %v1016_v51, %v935_v44  ;;  %v1085_v20 = vld [vmem:[#allocation4 + $0x28] sm:$0xff]  ;;  %v1243_v3 = vsub.f32 %v1215_v60, %v1229_v42  ;;  %v1154_v5 = vadd.f32 1e-05, %v1140_v57  ;;  %v1120_v38 = vmul.f32 %v2873_v27, %v2873_v27  ;;  %v1216_v57 = vld [vmem:[%s3041_s3 + $0x50] sm:$0xff]  ;;  %v1191_v60 = vld [vmem:[%s3040_s2 + $0x68] sm:$0xff] }
 0x21a   :  { %1048 = vst.msk [vmem:[#allocation4 + $0x68] sm:$0xff] %vm21_vm1, %v1034_v40  ;;  %1782 = vrsqrt.f32 %v1161_v55  ;;  %v1099_v61 = vmul.f32 0.0051020407, %v1085_v20  ;;  %v1058_v1 = vld [vmem:[#allocation3 + $0x30] sm:$0xff]  ;;  %v1236_v49 = vsub.f32 %v1208_v36, %v1222_v43  ;;  %v1217_v51 = vld [vmem:[%s3041_s3 + $0x58] sm:$0xff]  ;;  %v1182_v40 = vld [vmem:[%s3040_s2 + $0x20] sm:$0xff] }
 0x21b   :  { %1047 = vst.msk [vmem:[#allocation4 + $0x60] sm:$0xff] %vm21_vm1, %v1033_v19  ;;  %1381 = vperm.xlu0 %1764, %v1235_v53   ;;  %v2875_v14 = vmul.f32 0.0051020407, %v1058_v1  ;;  %1784 = vrsqrt.f32 %v1154_v5  ;;  %v1251_v43 = vld [vmem:[#allocation2 + $0x18] sm:$0xff] }
 0x21c   :  { %1288 = vperm.xlu1 %1765, %v1194_v25   ;;  %v1127_v58 = vsub.f32 %v1099_v61, %v1113_v62  ;;  %v1779_v63 = vpop.eup %1778 }
 0x21d   :  { %v1065_v7 = vld [vmem:[#allocation3 + $0x68] sm:$0xff]  ;;  %v1195_v15 = vmul.f32 %v1779_v63, %v1181_v12  ;;  %v1781_v28 = vpop.eup %1780  ;;  %v1114_v39 = vmul.f32 %v2875_v14, %v2875_v14  ;;  %v1184_v12 = vld [vmem:[%s3040_s2 + $0x30] sm:$0xff] }
 0x21e   :  { %v1141_v48 = vmax.f32 %v1127_v58, 0.0  ;;  %v2871_v0 = vmul.f32 0.0051020407, %v1065_v7  ;;  %v1086_v13 = vld [vmem:[#allocation4 + $0x30] sm:$0xff]  ;;  %v1202_v54 = vmul.f32 %v1781_v28, %v1188_v37 }
 0x21f   :  { %1421 = vperm.xlu0 %1764, %v1243_v3   ;;  %v1100_v16 = vmul.f32 0.0051020407, %v1086_v13  ;;  %v1223_v29 = vmul.f32 %v1195_v15, %v2806_v17 }
 0x220   :  { %1416 = vperm.xlu1 %1765, %v1242_v21   ;;  %v1155_v2 = vadd.f32 1e-05, %v1141_v48  ;;  %v1121_v33 = vmul.f32 %v2871_v0, %v2871_v0  ;;  %v1230_v42 = vmul.f32 %v1202_v54, %v2810_v23  ;;  %v1210_v21 = vld [vmem:[%s3041_s3 + $0x20] sm:$0xff] }
 0x221   :  { %v1093_v22 = vld [vmem:[#allocation4 + $0x68] sm:$0xff]  ;;  %v1128_v8 = vsub.f32 %v1100_v16, %v1114_v39  ;;  %v1237_v45 = vsub.f32 %v1209_v30, %v1223_v29  ;;  %v1218_v16 = vld [vmem:[%s3041_s3 + $0x60] sm:$0xff]  ;;  %v1250_v30 = vld [vmem:[#allocation2 + $0x10] sm:$0xff] }
 0x222   :  { %v1107_v32 = vmul.f32 0.0051020407, %v1093_v22  ;;  %v1092_v35 = vld [vmem:[#allocation4 + $0x60] sm:$0xff]  ;;  %1786 = vrsqrt.f32 %v1155_v2  ;;  %v1244_v25 = vsub.f32 %v1216_v57, %v1230_v42 }
 0x223   :  { %v1106_v10 = vmul.f32 0.0051020407, %v1092_v35  ;;  %v1142_v9 = vmax.f32 %v1128_v8, 0.0  ;;  %v1212_v2 = vld [vmem:[%s3041_s3 + $0x30] sm:$0xff]  ;;  %v1263_v35 = vld [vmem:[#allocation2 + $0x78] sm:$0xff] }
 0x224   :  { %v1783_v6 = vpop.eup %1782  ;;  %1293 = vperm.xlu1 %1765, %v1195_v15   ;;  %v1135_v46 = vsub.f32 %v1107_v32, %v1121_v33  ;;  %v1262_v33 = vld [vmem:[#allocation2 + $0x70] sm:$0xff] }
 0x225   :  { %v1203_v34 = vmul.f32 %v1783_v6, %v1189_v31  ;;  %v1134_v41 = vsub.f32 %v1106_v10, %v1120_v38  ;;  %v1785_v59 = vpop.eup %1784  ;;  %v1156_v55 = vadd.f32 1e-05, %v1142_v9 }
 0x226   :  { %v1149_v52 = vmax.f32 %v1135_v46, 0.0  ;;  %v1248_v46 = vld [vmem:[#allocation2] sm:$0xff] }
 0x227   :  { %1333 = vperm.xlu0 %1764, %v1203_v34   ;;  %v1148_v44 = vmax.f32 %v1134_v41, 0.0  ;;  %v1231_v17 = vmul.f32 %v1203_v34, %v2823_v4  ;;  %v1196_v4 = vmul.f32 %v1785_v59, %v1182_v40  ;;  %v1249_v34 = vld [vmem:[#allocation2 + $0x8] sm:$0xff]  ;;  %v1264_v59 = vld [vmem:[#allocation2 + $0x80] sm:$0xff] }
 0x228   :  { %1328 = vperm.xlu1 %1765, %v1202_v54   ;;  %v1163_v24 = vadd.f32 1e-05, %v1149_v52  ;;  %v1265_v40 = vld [vmem:[#allocation2 + $0x88] sm:$0xff] }
 0x229   :  { %v1162_v50 = vadd.f32 1e-05, %v1148_v44  ;;  %v1245_v53 = vsub.f32 %v1217_v51, %v1231_v17  ;;  %v1224_v7 = vmul.f32 %v1196_v4, %v2829_v11  ;;  %v1267_v51 = vld [vmem:[#allocation2 + $0x98] sm:$0xff] }
 0x22a   :  { %1788 = vrsqrt.f32 %v1163_v24 }
 0x22b   :  { %1391 = vperm.xlu0 %1764, %v1237_v45   ;;  %1790 = vrsqrt.f32 %v1162_v50 }
 0x22c   :  { %1386 = vperm.xlu1 %1765, %v1236_v49   ;;  %v1787_v19 = vpop.eup %1786  ;;  %1792 = vrsqrt.f32 %v1156_v55  ;;  %v1266_v49 = vld [vmem:[#allocation2 + $0x90] sm:$0xff] }
 0x22d   :  { %v1197_v20 = vmul.f32 %v1787_v19, %v1183_v56 }
 0x22f   :  { %1431 = vperm.xlu0 %1764, %v1245_v53   ;;  %v1225_v62 = vmul.f32 %v1197_v20, %v2850_v18  ;;  %v1219_v18 = vld [vmem:[%s3041_s3 + $0x68] sm:$0xff] }
 0x230   :  { %1298 = vperm.xlu1 %1765, %v1196_v4  }
 0x231   :  { %v1239_v1 = vsub.f32 %v1211_v47, %v1225_v62  ;;  %v1254_v47 = vld [vmem:[#allocation2 + $0x30] sm:$0xff] }
 0x234   :  { %v1789_v61 = vpop.eup %1788  ;;  %1426 = vperm.xlu1 %1765, %v1244_v25  }
 0x235   :  { %v1205_v23 = vmul.f32 %v1789_v61, %v1191_v60  ;;  %v1791_v58 = vpop.eup %1790 }
 0x236   :  { %v1204_v5 = vmul.f32 %v1791_v58, %v1190_v26  ;;  %v1793_v63 = vpop.eup %1792  ;;  %v1255_v58 = vld [vmem:[#allocation2 + $0x38] sm:$0xff]  ;;  %v1252_v26 = vld [vmem:[#allocation2 + $0x20] sm:$0xff] }
 0x237   :  { %1343 = vperm.xlu0 %1764, %v1205_v23   ;;  %v1233_v3 = vmul.f32 %v1205_v23, %v2871_v0  ;;  %v1238_v0 = vsub.f32 %v1210_v21, %v1224_v7  ;;  %v1198_v13 = vmul.f32 %v1793_v63, %v1184_v12 }
 0x238   :  { %1303 = vperm.xlu1 %1765, %v1197_v20   ;;  %v1232_v22 = vmul.f32 %v1204_v5, %v2873_v27 }
 0x239   :  { %v1247_v48 = vsub.f32 %v1219_v18, %v1233_v3  ;;  %v1226_v11 = vmul.f32 %v1198_v13, %v2875_v14 }
 0x23a   :  { %v1246_v28 = vsub.f32 %v1218_v16, %v1232_v22 }
 0x23b   :  { %1401 = vperm.xlu0 %1764, %v1239_v1   ;;  %v1240_v15 = vsub.f32 %v1212_v2, %v1226_v11  ;;  %v1253_v1 = vld [vmem:[#allocation2 + $0x28] sm:$0xff] }
 0x23c   :  { %1338 = vperm.xlu1 %1765, %v1204_v5  }
 0x23f   :  { %1441 = vperm.xlu0 %1764, %v1247_v48  }
 0x240   :  { %1396 = vperm.xlu1 %1765, %v1238_v0   ;;  %v1270_v0 = vld [vmem:[#allocation2 + $0xb0] sm:$0xff] }
 0x244   :  { %1308 = vperm.xlu1 %1765, %v1198_v13   ;;  %v1271_v13 = vld [vmem:[#allocation2 + $0xb8] sm:$0xff] }
 0x248   :  { %1406 = vperm.xlu1 %1765, %v1240_v15  }
 0x24c   :  { %1436 = vperm.xlu1 %1765, %v1246_v28  }
 0x286   :  { %v1314_v32 = vpop.permute.xlu1 %1313 }
 0x287   :  { %v1279_v31 = vpop.permute.xlu0 %1278  ;;  %v1360_v14 = vmul.f32 %v1314_v32, %v1262_v33  ;;  %v1361_v37 = vmul.f32 %v1314_v32, %v1263_v35  ;;  %v1268_v33 = vld [vmem:[#allocation2 + $0xa0] sm:$0xff]  ;;  %v1269_v35 = vld [vmem:[#allocation2 + $0xa8] sm:$0xff] }
 0x288   :  { %v1346_v29 = vmul.f32 %v1279_v31, %v1248_v46  ;;  %v1347_v41 = vmul.f32 %v1279_v31, %v1249_v34  ;;  %v1258_v46 = vld [vmem:[#allocation2 + $0x50] sm:$0xff]  ;;  %v1259_v34 = vld [vmem:[#allocation2 + $0x58] sm:$0xff] }
 0x28b   :  { %v1412_v10 = vpop.permute.xlu0 %1411 }
 0x28c   :  { %v1458_v38 = vadd.f32 %v1412_v10, %v1360_v14  ;;  %v1459_v39 = vadd.f32 %v1412_v10, %v1361_v37 }
 0x28d   :  { %v1284_v27 = vpop.permute.xlu1 %1283 }
 0x28e   :  { %1486 = vst [vmem:[%s3042_s4 + $0x70] sm:$0xff] %v1458_v38  ;;  %1487 = vst.msk [vmem:[%s3042_s4 + $0x78] sm:$0xff] %vm796_vm2, %v1459_v39  ;;  %v1348_v44 = vmul.f32 %v1284_v27, %v1250_v30  ;;  %v1349_v24 = vmul.f32 %v1284_v27, %v1251_v43 }
 0x293   :  { %v1319_v6 = vpop.permute.xlu1 %1318 }
 0x294   :  { %v1362_v19 = vmul.f32 %v1319_v6, %v1264_v59  ;;  %v1363_v4 = vmul.f32 %v1319_v6, %v1265_v40 }
 0x296   :  { %v1324_v8 = vpop.permute.xlu0 %1323 }
 0x297   :  { %v1377_v54 = vpop.permute.xlu1 %1376  ;;  %v1364_v53 = vmul.f32 %v1324_v8, %v1266_v49  ;;  %v1365_v55 = vmul.f32 %v1324_v8, %v1267_v51 }
 0x298   :  { %v1444_v52 = vadd.f32 %v1377_v54, %v1346_v29  ;;  %v1445_v36 = vadd.f32 %v1377_v54, %v1347_v41 }
 0x29a   :  { %1472 = vst [vmem:[%s3042_s4] sm:$0xff] %v1444_v52  ;;  %1473 = vst.msk [vmem:[%s3042_s4 + $0x8] sm:$0xff] %vm796_vm2, %v1445_v36  ;;  %v1382_v45 = vpop.permute.xlu0 %1381  ;;  %v1274_v52 = vld [vmem:[#allocation2 + $0xd0] sm:$0xff]  ;;  %v1275_v36 = vld [vmem:[#allocation2 + $0xd8] sm:$0xff] }
 0x29b   :  { %v1446_v17 = vadd.f32 %v1382_v45, %v1348_v44  ;;  %v1447_v50 = vadd.f32 %v1382_v45, %v1349_v24  ;;  %v1289_v9 = vpop.permute.xlu1 %1288  ;;  %v1256_v44 = vld [vmem:[#allocation2 + $0x40] sm:$0xff]  ;;  %v1257_v24 = vld [vmem:[#allocation2 + $0x48] sm:$0xff] }
 0x29c   :  { %v1350_v7 = vmul.f32 %v1289_v9, %v1252_v26  ;;  %v1351_v18 = vmul.f32 %v1289_v9, %v1253_v1 }
 0x29d   :  { %1474 = vst [vmem:[%s3042_s4 + $0x10] sm:$0xff] %v1446_v17  ;;  %1475 = vst.msk [vmem:[%s3042_s4 + $0x18] sm:$0xff] %vm796_vm2, %v1447_v50 }
 0x29e   :  { %v1422_v42 = vpop.permute.xlu0 %1421 }
 0x29f   :  { %v1462_v56 = vadd.f32 %v1422_v42, %v1364_v53  ;;  %v1463_v57 = vadd.f32 %v1422_v42, %v1365_v55  ;;  %v1417_v20 = vpop.permute.xlu1 %1416  ;;  %v1261_v42 = vld [vmem:[#allocation2 + $0x68] sm:$0xff] }
 0x2a0   :  { %v1460_v25 = vadd.f32 %v1417_v20, %v1362_v19  ;;  %v1461_v60 = vadd.f32 %v1417_v20, %v1363_v4  ;;  %v1260_v4 = vld [vmem:[#allocation2 + $0x60] sm:$0xff] }
 0x2a1   :  { %1490 = vst [vmem:[%s3042_s4 + $0x90] sm:$0xff] %v1462_v56  ;;  %1491 = vst.msk [vmem:[%s3042_s4 + $0x98] sm:$0xff] %vm796_vm2, %v1463_v57 }
 0x2a2   :  { %1488 = vst [vmem:[%s3042_s4 + $0x80] sm:$0xff] %v1460_v25  ;;  %1489 = vst.msk [vmem:[%s3042_s4 + $0x88] sm:$0xff] %vm796_vm2, %v1461_v60 }
 0x2a3   :  { %v1294_v61 = vpop.permute.xlu1 %1293 }
 0x2a4   :  { %v1352_v3 = vmul.f32 %v1294_v61, %v1254_v47  ;;  %v1353_v5 = vmul.f32 %v1294_v61, %v1255_v58  ;;  %v1272_v61 = vld [vmem:[#allocation2 + $0xc0] sm:$0xff] }
 0x2a6   :  { %v1334_v23 = vpop.permute.xlu0 %1333 }
 0x2a7   :  { %v1329_v62 = vpop.permute.xlu1 %1328  ;;  %v1368_v15 = vmul.f32 %v1334_v23, %v1270_v0  ;;  %v1369_v22 = vmul.f32 %v1334_v23, %v1271_v13  ;;  %v1273_v23 = vld [vmem:[#allocation2 + $0xc8] sm:$0xff] }
 0x2a8   :  { %v1366_v14 = vmul.f32 %v1329_v62, %v1268_v33  ;;  %v1367_v37 = vmul.f32 %v1329_v62, %v1269_v35 }
 0x2aa   :  { %v1392_v63 = vpop.permute.xlu0 %1391 }
 0x2ab   :  { %v1450_v21 = vadd.f32 %v1392_v63, %v1352_v3  ;;  %v1451_v12 = vadd.f32 %v1392_v63, %v1353_v5  ;;  %v1387_v48 = vpop.permute.xlu1 %1386 }
 0x2ac   :  { %v1448_v11 = vadd.f32 %v1387_v48, %v1350_v7  ;;  %v1449_v2 = vadd.f32 %v1387_v48, %v1351_v18 }
 0x2ad   :  { %1478 = vst [vmem:[%s3042_s4 + $0x30] sm:$0xff] %v1450_v21  ;;  %1479 = vst.msk [vmem:[%s3042_s4 + $0x38] sm:$0xff] %vm796_vm2, %v1451_v12 }
 0x2ae   :  { %1476 = vst [vmem:[%s3042_s4 + $0x20] sm:$0xff] %v1448_v11  ;;  %1477 = vst.msk [vmem:[%s3042_s4 + $0x28] sm:$0xff] %vm796_vm2, %v1449_v2  ;;  %v1432_v16 = vpop.permute.xlu0 %1431 }
 0x2af   :  { %v1466_v28 = vadd.f32 %v1432_v16, %v1368_v15  ;;  %v1467_v31 = vadd.f32 %v1432_v16, %v1369_v22  ;;  %v1299_v32 = vpop.permute.xlu1 %1298 }
 0x2b0   :  { %v1354_v50 = vmul.f32 %v1299_v32, %v1256_v44  ;;  %v1355_v9 = vmul.f32 %v1299_v32, %v1257_v24 }
 0x2b1   :  { %1494 = vst [vmem:[%s3042_s4 + $0xb0] sm:$0xff] %v1466_v28  ;;  %1495 = vst.msk [vmem:[%s3042_s4 + $0xb8] sm:$0xff] %vm796_vm2, %v1467_v31 }
 0x2b3   :  { %v1427_v10 = vpop.permute.xlu1 %1426 }
 0x2b4   :  { %v1464_v38 = vadd.f32 %v1427_v10, %v1366_v14  ;;  %v1465_v39 = vadd.f32 %v1427_v10, %v1367_v37 }
 0x2b6   :  { %1492 = vst [vmem:[%s3042_s4 + $0xa0] sm:$0xff] %v1464_v38  ;;  %1493 = vst.msk [vmem:[%s3042_s4 + $0xa8] sm:$0xff] %vm796_vm2, %v1465_v39  ;;  %v1344_v27 = vpop.permute.xlu0 %1343 }
 0x2b7   :  { %v1304_v6 = vpop.permute.xlu1 %1303  ;;  %v1372_v45 = vmul.f32 %v1344_v27, %v1274_v52  ;;  %v1373_v17 = vmul.f32 %v1344_v27, %v1275_v36 }
 0x2b8   :  { %v1356_v29 = vmul.f32 %v1304_v6, %v1258_v46  ;;  %v1357_v41 = vmul.f32 %v1304_v6, %v1259_v34 }
 0x2ba   :  { %v1402_v8 = vpop.permute.xlu0 %1401 }
 0x2bb   :  { %v1454_v54 = vadd.f32 %v1402_v8, %v1356_v29  ;;  %v1455_v30 = vadd.f32 %v1402_v8, %v1357_v41  ;;  %v1339_v43 = vpop.permute.xlu1 %1338 }
 0x2bc   :  { %v1370_v62 = vmul.f32 %v1339_v43, %v1272_v61  ;;  %v1371_v47 = vmul.f32 %v1339_v43, %v1273_v23 }
 0x2bd   :  { %1482 = vst [vmem:[%s3042_s4 + $0x50] sm:$0xff] %v1454_v54  ;;  %1483 = vst.msk [vmem:[%s3042_s4 + $0x58] sm:$0xff] %vm796_vm2, %v1455_v30 }
 0x2be   :  { %v1442_v49 = vpop.permute.xlu0 %1441 }
 0x2bf   :  { %v1470_v51 = vadd.f32 %v1442_v49, %v1372_v45  ;;  %v1471_v59 = vadd.f32 %v1442_v49, %v1373_v17  ;;  %v1397_v40 = vpop.permute.xlu1 %1396 }
 0x2c0   :  { %v1452_v53 = vadd.f32 %v1397_v40, %v1354_v50  ;;  %v1453_v55 = vadd.f32 %v1397_v40, %v1355_v9 }
 0x2c1   :  { %1498 = vst [vmem:[%s3042_s4 + $0xd0] sm:$0xff] %v1470_v51  ;;  %1499 = vst.msk [vmem:[%s3042_s4 + $0xd8] sm:$0xff] %vm796_vm2, %v1471_v59 }
 0x2c2   :  { %1480 = vst [vmem:[%s3042_s4 + $0x40] sm:$0xff] %v1452_v53  ;;  %1481 = vst.msk [vmem:[%s3042_s4 + $0x48] sm:$0xff] %vm796_vm2, %v1453_v55 }
 0x2c3   :  { %v1309_v19 = vpop.permute.xlu1 %1308 }
 0x2c4   :  { %v1358_v56 = vmul.f32 %v1309_v19, %v1260_v4  ;;  %v1359_v57 = vmul.f32 %v1309_v19, %v1261_v42 }
 0x2c7   :  { %v1407_v20 = vpop.permute.xlu1 %1406 }
 0x2c8   :  { %v1456_v25 = vadd.f32 %v1407_v20, %v1358_v56  ;;  %v1457_v60 = vadd.f32 %v1407_v20, %v1359_v57 }
 0x2ca   :  { %1484 = vst [vmem:[%s3042_s4 + $0x60] sm:$0xff] %v1456_v25  ;;  %1485 = vst.msk [vmem:[%s3042_s4 + $0x68] sm:$0xff] %vm796_vm2, %v1457_v60 }
 0x2cb   :  { %v1437_v58 = vpop.permute.xlu1 %1436 }
 0x2cc   :  { %v1468_v26 = vadd.f32 %v1437_v58, %v1370_v62  ;;  %v1469_v1 = vadd.f32 %v1437_v58, %v1371_v47 }
 0x2ce   :  { %1496 = vst [vmem:[%s3042_s4 + $0xc0] sm:$0xff] %v1468_v26  ;;  %1497 = vst.msk [vmem:[%s3042_s4 + $0xc8] sm:$0xff] %vm796_vm2, %v1469_v1 }

</bundles_post_ra>
